<compile_context>
chip_gen: v5e
topology: v5e:2x2
jax: 0.10.0
libtpu: 0.0.40
codegen_flags: <defaults>
</compile_context>

<pallas_src>
import functools

import jax
import jax.numpy as jnp
from jax.experimental import pallas as pl
from jax.experimental.pallas import tpu as pltpu


# Set to jnp.bfloat16 on v6e/v7x to use the fast bf16 MXU path (f32 accumulate);
# kept f32 by default to match PyTorch numerics exactly.
MATMUL_DTYPE = jnp.float32


# ----------------------------- Pallas kernels -----------------------------

def _instance_norm(y):
    # InstanceNorm over the lane (HW) axis: biased variance, eps=1e-5, no affine
    # (matches torch.nn.InstanceNorm2d defaults).
    mean = jnp.mean(y, axis=-1, keepdims=True)
    var = jnp.mean(jnp.square(y - mean), axis=-1, keepdims=True)
    return (y - mean) * jax.lax.rsqrt(var + 1e-5)


def conv_in_relu_kernel(p_ref, w_ref, b_ref, o_ref):
    # p: (K, HW)  w: (Cout, K)  b: (Cout, 1)  o: (Cout, HW)
    y = jnp.dot(w_ref[...].astype(MATMUL_DTYPE),
                p_ref[...].astype(MATMUL_DTYPE),
                preferred_element_type=jnp.float32) + b_ref[...]
    o_ref[...] = jnp.maximum(_instance_norm(y), 0.0)


def conv_in_add_kernel(p_ref, w_ref, b_ref, r_ref, o_ref):
    # Same as above but the epilogue is IN (no activation) + residual add.
    y = jnp.dot(w_ref[...].astype(MATMUL_DTYPE),
                p_ref[...].astype(MATMUL_DTYPE),
                preferred_element_type=jnp.float32) + b_ref[...]
    o_ref[...] = _instance_norm(y) + r_ref[...]


# ------------------------------- conv glue --------------------------------

def _round_up(x, m):
    return ((x + m - 1) // m) * m


def im2col_nchw(xp, k, stride):
    """Transposed im2col on padded NCHW input.

    Returns patches of shape (N, Cin*k*k, Ho*Wo); the K axis is ordered
    (cin, kh, kw) to match a PyTorch (Cout, Cin, kh, kw) weight flattened to
    (Cout, Cin*k*k).  Pure layout transform, done by XLA in the wrapper.
    """
    N, C, Hp, Wp = xp.shape
    Ho = (Hp - k) // stride + 1
    Wo = (Wp - k) // stride + 1
    taps = []
    for kh in range(k):
        for kw in range(k):
            taps.append(
                xp[:, :,
                   kh:kh + stride * (Ho - 1) + 1:stride,
                   kw:kw + stride * (Wo - 1) + 1:stride])   # (N, C, Ho, Wo)
    p = jnp.stack(taps, axis=2)                  # (N, C, k*k, Ho, Wo)
    p = p.reshape(N, C * k * k, Ho * Wo)         # K ordered (c, kh, kw)
    return p, Ho, Wo


def fused_conv_block(x_nchw, w_mat, bias, *, k, stride, pad, residual=None):
    """Conv2dBlock: reflect-pad -> conv + bias + IN (+ReLU | +residual) fused
    into a single Pallas kernel (grid over the batch dimension)."""
    N, Cin, H, W = x_nchw.shape
    Cout, Kp = w_mat.shape

    xp = jnp.pad(x_nchw, ((0, 0), (0, 0), (pad, pad), (pad, pad)),
                 mode="reflect")
    patches, Ho, Wo = im2col_nchw(xp, k, stride)         # (N, K, HW)
    K = patches.shape[1]
    if K < Kp:   # zero-pad contracting axis to the (128-multiple) weight K
        patches = jnp.pad(patches, ((0, 0), (0, Kp - K), (0, 0)))
    HW = Ho * Wo

    in_specs = [
        pl.BlockSpec((None, Kp, HW), lambda n: (n, 0, 0)),   # patches (per batch)
        pl.BlockSpec((Cout, Kp), lambda n: (0, 0)),          # weight (invariant)
        pl.BlockSpec((Cout, 1), lambda n: (0, 0)),           # bias   (invariant)
    ]
    args = [patches, w_mat, bias]
    if residual is None:
        kernel = conv_in_relu_kernel
        out_bytes = N * Cout * HW
    else:
        kernel = conv_in_add_kernel
        in_specs.append(pl.BlockSpec((None, Cout, HW), lambda n: (n, 0, 0)))
        args.append(residual.reshape(N, Cout, HW))
        out_bytes = 2 * N * Cout * HW

    flops = 2 * N * Cout * Kp * HW + 10 * N * Cout * HW
    bytes_accessed = 4 * (patches.size + w_mat.size + bias.size
                          + out_bytes + N * Cout * HW)

    y = pl.pallas_call(
        kernel,
        out_shape=jax.ShapeDtypeStruct((N, Cout, HW), jnp.float32),
        grid=(N,),
        in_specs=in_specs,
        out_specs=pl.BlockSpec((None, Cout, HW), lambda n: (n, 0, 0)),
        compiler_params=pltpu.CompilerParams(
            dimension_semantics=("parallel",),
            vmem_limit_bytes=32 * 1024 * 1024,
        ),
        cost_estimate=pl.CostEstimate(
            flops=flops, transcendentals=N * Cout,
            bytes_accessed=bytes_accessed),
    )(*args)

    return y.reshape(N, Cout, Ho, Wo)


# ------------------------------ BaseEncoder -------------------------------

def init_params(key, input_dim, dim, n_downsample, n_res):
    """Conv weights in PyTorch layout (Cout, Cin, kh, kw), flattened to
    (Cout, Cin*k*k) and zero-padded on K to a multiple of 128."""
    params = {}

    def conv_params(key, k, cin, cout):
        kw_, kb_ = jax.random.split(key)
        w = jax.random.normal(kw_, (cout, cin, k, k), jnp.float32) * 0.05
        b = jax.random.normal(kb_, (cout,), jnp.float32) * 0.01
        K = cin * k * k
        Kp = _round_up(K, 128)
        w_mat = jnp.pad(w.reshape(cout, K), ((0, 0), (0, Kp - K)))
        return w_mat, b.reshape(cout, 1)

    keys = jax.random.split(key, 1 + n_downsample + 2 * n_res)
    ki = 0
    params["conv_init"] = conv_params(keys[ki], 7, input_dim, dim); ki += 1
    d = dim
    params["down"] = []
    for _ in range(n_downsample):
        params["down"].append(conv_params(keys[ki], 4, d, 2 * d)); ki += 1
        d *= 2
    params["res"] = []
    for _ in range(n_res):
        c1 = conv_params(keys[ki], 3, d, d); ki += 1
        c2 = conv_params(keys[ki], 3, d, d); ki += 1
        params["res"].append((c1, c2))
    params["output_dim"] = d
    return params


def base_encoder_forward(params, x_nchw):
    # conv2d_init: 7x7, stride 1, pad 3, IN + ReLU
    w, b = params["conv_init"]
    h = fused_conv_block(x_nchw, w, b, k=7, stride=1, pad=3)
    # downsampling convs: 4x4, stride 2, pad 1, IN + ReLU
    for (w, b) in params["down"]:
        h = fused_conv_block(h, w, b, k=4, stride=2, pad=1)
    # residual blocks: [3x3 conv -> IN -> ReLU -> 3x3 conv -> IN] + x
    for (w1, b1), (w2, b2) in params["res"]:
        t = fused_conv_block(h, w1, b1, k=3, stride=1, pad=1)
        h = fused_conv_block(t, w2, b2, k=3, stride=1, pad=1, residual=h)
    return h


if __name__ == "__main__":
    # opts: input_dim=4, dim=8, n_downsample=2, n_res=2, norm=res_norm='instance',
    #       activ='relu', pad_type='reflect'
    INPUT_DIM, DIM, N_DOWN, N_RES = 4, 8, 2, 2
    BATCH, H, W = 2, 16, 16

    key = jax.random.PRNGKey(0)
    k_params, k_x = jax.random.split(key)
    params = init_params(k_params, INPUT_DIM, DIM, N_DOWN, N_RES)

    # PyTorch-style NCHW input.
    x_nchw = jax.random.normal(k_x, (BATCH, INPUT_DIM, H, W), jnp.float32)

    fwd = jax.jit(functools.partial(base_encoder_forward, params))
    out = jax.block_until_ready(fwd(x_nchw))

    expected = (BATCH, params["output_dim"], H // (2 ** N_DOWN), W // (2 ** N_DOWN))
    assert out.shape == expected, (out.shape, expected)
    assert bool(jnp.all(jnp.isfinite(out)))
    print("KERNEL_OK")
</pallas_src>

<mosaic_0001>
module attributes {stable_mosaic.version = 11 : i64} {
  func.func @conv_in_relu_kernel(%arg0: i32, %arg1: memref<1x256x256xf32, #tpu.memory_space<vmem>>, %arg2: memref<8x256xf32, #tpu.memory_space<vmem>>, %arg3: memref<8x1xf32, #tpu.memory_space<vmem>>, %arg4: memref<1x8x256xf32, #tpu.memory_space<vmem>>) attributes {dimension_semantics = [#tpu.dimension_semantics<parallel>], iteration_bounds = array<i64: 2>, scalar_prefetch = 0 : i64, scratch_operands = 0 : i64, tpu.core_type = #tpu.core_type<tc>, window_params = [{transform_indices = @transform_0, window_bounds = array<i64: 1, 256, 256>}, {pipeline_mode = #tpu.pipeline_mode<synchronous>, transform_indices = @transform_1, window_bounds = array<i64: 8, 256>}, {pipeline_mode = #tpu.pipeline_mode<synchronous>, transform_indices = @transform_2, window_bounds = array<i64: 8, 1>}, {transform_indices = @transform_3, window_bounds = array<i64: 1, 8, 256>}]} {
    %c0 = arith.constant 0 : index
    %c0_0 = arith.constant 0 : index
    %0 = vector.load %arg2[%c0, %c0_0] : memref<8x256xf32, #tpu.memory_space<vmem>>, vector<8x256xf32>
    %c0_1 = arith.constant 0 : index
    %c0_2 = arith.constant 0 : index
    %c0_3 = arith.constant 0 : index
    %1 = vector.load %arg1[%c0_1, %c0_2, %c0_3] : memref<1x256x256xf32, #tpu.memory_space<vmem>>, vector<1x256x256xf32>
    %2 = vector.shape_cast %1 : vector<1x256x256xf32> to vector<256x256xf32>
    %cst = arith.constant dense<0.000000e+00> : vector<8x256xf32>
    %3 = tpu.matmul %0, %2, %cst {dimension_numbers = #tpu.dot_dimension_numbers<[1], [0], [0], [1], [0, 0, 1, 1], [], []>} : vector<8x256xf32>, vector<256x256xf32>, vector<8x256xf32> -> vector<8x256xf32>
    %c0_4 = arith.constant 0 : index
    %c0_5 = arith.constant 0 : index
    %4 = vector.load %arg3[%c0_4, %c0_5] : memref<8x1xf32, #tpu.memory_space<vmem>>, vector<8x1xf32>
    %5 = vector.broadcast %4 : vector<8x1xf32> to vector<8x256xf32>
    %6 = arith.addf %3, %5 : vector<8x256xf32>
    %cst_6 = arith.constant dense<0.000000e+00> : vector<8xf32>
    %7 = vector.multi_reduction <add>, %6, %cst_6 [1] : vector<8x256xf32> to vector<8xf32>
    %8 = vector.shape_cast %7 : vector<8xf32> to vector<8x1xf32>
    %cst_7 = arith.constant 2.560000e+02 : f32
    %9 = vector.broadcast %cst_7 : f32 to vector<8x1xf32>
    %10 = arith.divf %8, %9 : vector<8x1xf32>
    %11 = vector.broadcast %10 : vector<8x1xf32> to vector<8x256xf32>
    %12 = arith.subf %6, %11 : vector<8x256xf32>
    %13 = arith.mulf %12, %12 : vector<8x256xf32>
    %cst_8 = arith.constant dense<0.000000e+00> : vector<8xf32>
    %14 = vector.multi_reduction <add>, %13, %cst_8 [1] : vector<8x256xf32> to vector<8xf32>
    %15 = vector.shape_cast %14 : vector<8xf32> to vector<8x1xf32>
    %cst_9 = arith.constant 2.560000e+02 : f32
    %16 = vector.broadcast %cst_9 : f32 to vector<8x1xf32>
    %17 = arith.divf %15, %16 : vector<8x1xf32>
    %18 = vector.broadcast %10 : vector<8x1xf32> to vector<8x256xf32>
    %19 = arith.subf %6, %18 : vector<8x256xf32>
    %cst_10 = arith.constant 9.99999974E-6 : f32
    %20 = vector.broadcast %cst_10 : f32 to vector<8x1xf32>
    %21 = arith.addf %17, %20 : vector<8x1xf32>
    %22 = math.rsqrt %21 : vector<8x1xf32>
    %23 = vector.broadcast %22 : vector<8x1xf32> to vector<8x256xf32>
    %24 = arith.mulf %19, %23 : vector<8x256xf32>
    %cst_11 = arith.constant 0.000000e+00 : f32
    %25 = vector.broadcast %cst_11 : f32 to vector<8x256xf32>
    %26 = arith.maximumf %24, %25 : vector<8x256xf32>
    %c0_12 = arith.constant 0 : index
    %c0_13 = arith.constant 0 : index
    %c0_14 = arith.constant 0 : index
    %27 = vector.load %arg4[%c0_12, %c0_13, %c0_14] : memref<1x8x256xf32, #tpu.memory_space<vmem>>, vector<1x8x256xf32>
    %28 = vector.shape_cast %27 : vector<1x8x256xf32> to vector<8x256xf32>
    %29 = vector.shape_cast %26 : vector<8x256xf32> to vector<1x8x256xf32>
    tpu.vector_store %arg4[%c0_12, %c0_13, %c0_14], %29 {strides = array<i32>} : memref<1x8x256xf32, #tpu.memory_space<vmem>>, vector<1x8x256xf32>,
    return
  }
  func.func @transform_0(%arg0: i32) -> (i32, i32, i32) {
    %c0_i32 = arith.constant 0 : i32
    %c0_i32_0 = arith.constant 0 : i32
    %c0_i32_1 = arith.constant 0 : i32
    return %arg0, %c0_i32, %c0_i32_0 : i32, i32, i32
  }
  func.func @transform_1(%arg0: i32) -> (i32, i32) {
    %c0_i32 = arith.constant 0 : i32
    %c0_i32_0 = arith.constant 0 : i32
    %c0_i32_1 = arith.constant 0 : i32
    return %c0_i32, %c0_i32_0 : i32, i32
  }
  func.func @transform_2(%arg0: i32) -> (i32, i32) {
    %c0_i32 = arith.constant 0 : i32
    %c0_i32_0 = arith.constant 0 : i32
    %c0_i32_1 = arith.constant 0 : i32
    return %c0_i32, %c0_i32_0 : i32, i32
  }
  func.func @transform_3(%arg0: i32) -> (i32, i32, i32) {
    %c0_i32 = arith.constant 0 : i32
    %c0_i32_0 = arith.constant 0 : i32
    %c0_i32_1 = arith.constant 0 : i32
    return %arg0, %c0_i32, %c0_i32_0 : i32, i32, i32
  }
}

module attributes {stable_mosaic.version = 11 : i64} {
  func.func @conv_in_relu_kernel(%arg0: i32, %arg1: memref<1x128x64xf32, #tpu.memory_space<vmem>>, %arg2: memref<16x128xf32, #tpu.memory_space<vmem>>, %arg3: memref<16x1xf32, #tpu.memory_space<vmem>>, %arg4: memref<1x16x64xf32, #tpu.memory_space<vmem>>) attributes {dimension_semantics = [#tpu.dimension_semantics<parallel>], iteration_bounds = array<i64: 2>, scalar_prefetch = 0 : i64, scratch_operands = 0 : i64, tpu.core_type = #tpu.core_type<tc>, window_params = [{transform_indices = @transform_0, window_bounds = array<i64: 1, 128, 64>}, {pipeline_mode = #tpu.pipeline_mode<synchronous>, transform_indices = @transform_1, window_bounds = array<i64: 16, 128>}, {pipeline_mode = #tpu.pipeline_mode<synchronous>, transform_indices = @transform_2, window_bounds = array<i64: 16, 1>}, {transform_indices = @transform_3, window_bounds = array<i64: 1, 16, 64>}]} {
    %c0 = arith.constant 0 : index
    %c0_0 = arith.constant 0 : index
    %0 = vector.load %arg2[%c0, %c0_0] : memref<16x128xf32, #tpu.memory_space<vmem>>, vector<16x128xf32>
    %c0_1 = arith.constant 0 : index
    %c0_2 = arith.constant 0 : index
    %c0_3 = arith.constant 0 : index
    %1 = vector.load %arg1[%c0_1, %c0_2, %c0_3] : memref<1x128x64xf32, #tpu.memory_space<vmem>>, vector<1x128x64xf32>
    %2 = vector.shape_cast %1 : vector<1x128x64xf32> to vector<128x64xf32>
    %cst = arith.constant dense<0.000000e+00> : vector<16x64xf32>
    %3 = tpu.matmul %0, %2, %cst {dimension_numbers = #tpu.dot_dimension_numbers<[1], [0], [0], [1], [0, 0, 1, 1], [], []>} : vector<16x128xf32>, vector<128x64xf32>, vector<16x64xf32> -> vector<16x64xf32>
    %c0_4 = arith.constant 0 : index
    %c0_5 = arith.constant 0 : index
    %4 = vector.load %arg3[%c0_4, %c0_5] : memref<16x1xf32, #tpu.memory_space<vmem>>, vector<16x1xf32>
    %5 = vector.broadcast %4 : vector<16x1xf32> to vector<16x64xf32>
    %6 = arith.addf %3, %5 : vector<16x64xf32>
    %cst_6 = arith.constant dense<0.000000e+00> : vector<16xf32>
    %7 = vector.multi_reduction <add>, %6, %cst_6 [1] : vector<16x64xf32> to vector<16xf32>
    %8 = vector.shape_cast %7 : vector<16xf32> to vector<16x1xf32>
    %cst_7 = arith.constant 6.400000e+01 : f32
    %9 = vector.broadcast %cst_7 : f32 to vector<16x1xf32>
    %10 = arith.divf %8, %9 : vector<16x1xf32>
    %11 = vector.broadcast %10 : vector<16x1xf32> to vector<16x64xf32>
    %12 = arith.subf %6, %11 : vector<16x64xf32>
    %13 = arith.mulf %12, %12 : vector<16x64xf32>
    %cst_8 = arith.constant dense<0.000000e+00> : vector<16xf32>
    %14 = vector.multi_reduction <add>, %13, %cst_8 [1] : vector<16x64xf32> to vector<16xf32>
    %15 = vector.shape_cast %14 : vector<16xf32> to vector<16x1xf32>
    %cst_9 = arith.constant 6.400000e+01 : f32
    %16 = vector.broadcast %cst_9 : f32 to vector<16x1xf32>
    %17 = arith.divf %15, %16 : vector<16x1xf32>
    %18 = vector.broadcast %10 : vector<16x1xf32> to vector<16x64xf32>
    %19 = arith.subf %6, %18 : vector<16x64xf32>
    %cst_10 = arith.constant 9.99999974E-6 : f32
    %20 = vector.broadcast %cst_10 : f32 to vector<16x1xf32>
    %21 = arith.addf %17, %20 : vector<16x1xf32>
    %22 = math.rsqrt %21 : vector<16x1xf32>
    %23 = vector.broadcast %22 : vector<16x1xf32> to vector<16x64xf32>
    %24 = arith.mulf %19, %23 : vector<16x64xf32>
    %cst_11 = arith.constant 0.000000e+00 : f32
    %25 = vector.broadcast %cst_11 : f32 to vector<16x64xf32>
    %26 = arith.maximumf %24, %25 : vector<16x64xf32>
    %c0_12 = arith.constant 0 : index
    %c0_13 = arith.constant 0 : index
    %c0_14 = arith.constant 0 : index
    %27 = vector.load %arg4[%c0_12, %c0_13, %c0_14] : memref<1x16x64xf32, #tpu.memory_space<vmem>>, vector<1x16x64xf32>
    %28 = vector.shape_cast %27 : vector<1x16x64xf32> to vector<16x64xf32>
    %29 = vector.shape_cast %26 : vector<16x64xf32> to vector<1x16x64xf32>
    tpu.vector_store %arg4[%c0_12, %c0_13, %c0_14], %29 {strides = array<i32>} : memref<1x16x64xf32, #tpu.memory_space<vmem>>, vector<1x16x64xf32>,
    return
  }
  func.func @transform_0(%arg0: i32) -> (i32, i32, i32) {
    %c0_i32 = arith.constant 0 : i32
    %c0_i32_0 = arith.constant 0 : i32
    %c0_i32_1 = arith.constant 0 : i32
    return %arg0, %c0_i32, %c0_i32_0 : i32, i32, i32
  }
  func.func @transform_1(%arg0: i32) -> (i32, i32) {
    %c0_i32 = arith.constant 0 : i32
    %c0_i32_0 = arith.constant 0 : i32
    %c0_i32_1 = arith.constant 0 : i32
    return %c0_i32, %c0_i32_0 : i32, i32
  }
  func.func @transform_2(%arg0: i32) -> (i32, i32) {
    %c0_i32 = arith.constant 0 : i32
    %c0_i32_0 = arith.constant 0 : i32
    %c0_i32_1 = arith.constant 0 : i32
    return %c0_i32, %c0_i32_0 : i32, i32
  }
  func.func @transform_3(%arg0: i32) -> (i32, i32, i32) {
    %c0_i32 = arith.constant 0 : i32
    %c0_i32_0 = arith.constant 0 : i32
    %c0_i32_1 = arith.constant 0 : i32
    return %arg0, %c0_i32, %c0_i32_0 : i32, i32, i32
  }
}

module attributes {stable_mosaic.version = 11 : i64} {
  func.func @conv_in_relu_kernel(%arg0: i32, %arg1: memref<1x256x16xf32, #tpu.memory_space<vmem>>, %arg2: memref<32x256xf32, #tpu.memory_space<vmem>>, %arg3: memref<32x1xf32, #tpu.memory_space<vmem>>, %arg4: memref<1x32x16xf32, #tpu.memory_space<vmem>>) attributes {dimension_semantics = [#tpu.dimension_semantics<parallel>], iteration_bounds = array<i64: 2>, scalar_prefetch = 0 : i64, scratch_operands = 0 : i64, tpu.core_type = #tpu.core_type<tc>, window_params = [{transform_indices = @transform_0, window_bounds = array<i64: 1, 256, 16>}, {pipeline_mode = #tpu.pipeline_mode<synchronous>, transform_indices = @transform_1, window_bounds = array<i64: 32, 256>}, {pipeline_mode = #tpu.pipeline_mode<synchronous>, transform_indices = @transform_2, window_bounds = array<i64: 32, 1>}, {transform_indices = @transform_3, window_bounds = array<i64: 1, 32, 16>}]} {
    %c0 = arith.constant 0 : index
    %c0_0 = arith.constant 0 : index
    %0 = vector.load %arg2[%c0, %c0_0] : memref<32x256xf32, #tpu.memory_space<vmem>>, vector<32x256xf32>
    %c0_1 = arith.constant 0 : index
    %c0_2 = arith.constant 0 : index
    %c0_3 = arith.constant 0 : index
    %1 = vector.load %arg1[%c0_1, %c0_2, %c0_3] : memref<1x256x16xf32, #tpu.memory_space<vmem>>, vector<1x256x16xf32>
    %2 = vector.shape_cast %1 : vector<1x256x16xf32> to vector<256x16xf32>
    %cst = arith.constant dense<0.000000e+00> : vector<32x16xf32>
    %3 = tpu.matmul %0, %2, %cst {dimension_numbers = #tpu.dot_dimension_numbers<[1], [0], [0], [1], [0, 0, 1, 1], [], []>} : vector<32x256xf32>, vector<256x16xf32>, vector<32x16xf32> -> vector<32x16xf32>
    %c0_4 = arith.constant 0 : index
    %c0_5 = arith.constant 0 : index
    %4 = vector.load %arg3[%c0_4, %c0_5] : memref<32x1xf32, #tpu.memory_space<vmem>>, vector<32x1xf32>
    %5 = vector.broadcast %4 : vector<32x1xf32> to vector<32x16xf32>
    %6 = arith.addf %3, %5 : vector<32x16xf32>
    %cst_6 = arith.constant dense<0.000000e+00> : vector<32xf32>
    %7 = vector.multi_reduction <add>, %6, %cst_6 [1] : vector<32x16xf32> to vector<32xf32>
    %8 = vector.shape_cast %7 : vector<32xf32> to vector<32x1xf32>
    %cst_7 = arith.constant 1.600000e+01 : f32
    %9 = vector.broadcast %cst_7 : f32 to vector<32x1xf32>
    %10 = arith.divf %8, %9 : vector<32x1xf32>
    %11 = vector.broadcast %10 : vector<32x1xf32> to vector<32x16xf32>
    %12 = arith.subf %6, %11 : vector<32x16xf32>
    %13 = arith.mulf %12, %12 : vector<32x16xf32>
    %cst_8 = arith.constant dense<0.000000e+00> : vector<32xf32>
    %14 = vector.multi_reduction <add>, %13, %cst_8 [1] : vector<32x16xf32> to vector<32xf32>
    %15 = vector.shape_cast %14 : vector<32xf32> to vector<32x1xf32>
    %cst_9 = arith.constant 1.600000e+01 : f32
    %16 = vector.broadcast %cst_9 : f32 to vector<32x1xf32>
    %17 = arith.divf %15, %16 : vector<32x1xf32>
    %18 = vector.broadcast %10 : vector<32x1xf32> to vector<32x16xf32>
    %19 = arith.subf %6, %18 : vector<32x16xf32>
    %cst_10 = arith.constant 9.99999974E-6 : f32
    %20 = vector.broadcast %cst_10 : f32 to vector<32x1xf32>
    %21 = arith.addf %17, %20 : vector<32x1xf32>
    %22 = math.rsqrt %21 : vector<32x1xf32>
    %23 = vector.broadcast %22 : vector<32x1xf32> to vector<32x16xf32>
    %24 = arith.mulf %19, %23 : vector<32x16xf32>
    %cst_11 = arith.constant 0.000000e+00 : f32
    %25 = vector.broadcast %cst_11 : f32 to vector<32x16xf32>
    %26 = arith.maximumf %24, %25 : vector<32x16xf32>
    %c0_12 = arith.constant 0 : index
    %c0_13 = arith.constant 0 : index
    %c0_14 = arith.constant 0 : index
    %27 = vector.load %arg4[%c0_12, %c0_13, %c0_14] : memref<1x32x16xf32, #tpu.memory_space<vmem>>, vector<1x32x16xf32>
    %28 = vector.shape_cast %27 : vector<1x32x16xf32> to vector<32x16xf32>
    %29 = vector.shape_cast %26 : vector<32x16xf32> to vector<1x32x16xf32>
    tpu.vector_store %arg4[%c0_12, %c0_13, %c0_14], %29 {strides = array<i32>} : memref<1x32x16xf32, #tpu.memory_space<vmem>>, vector<1x32x16xf32>,
    return
  }
  func.func @transform_0(%arg0: i32) -> (i32, i32, i32) {
    %c0_i32 = arith.constant 0 : i32
    %c0_i32_0 = arith.constant 0 : i32
    %c0_i32_1 = arith.constant 0 : i32
    return %arg0, %c0_i32, %c0_i32_0 : i32, i32, i32
  }
  func.func @transform_1(%arg0: i32) -> (i32, i32) {
    %c0_i32 = arith.constant 0 : i32
    %c0_i32_0 = arith.constant 0 : i32
    %c0_i32_1 = arith.constant 0 : i32
    return %c0_i32, %c0_i32_0 : i32, i32
  }
  func.func @transform_2(%arg0: i32) -> (i32, i32) {
    %c0_i32 = arith.constant 0 : i32
    %c0_i32_0 = arith.constant 0 : i32
    %c0_i32_1 = arith.constant 0 : i32
    return %c0_i32, %c0_i32_0 : i32, i32
  }
  func.func @transform_3(%arg0: i32) -> (i32, i32, i32) {
    %c0_i32 = arith.constant 0 : i32
    %c0_i32_0 = arith.constant 0 : i32
    %c0_i32_1 = arith.constant 0 : i32
    return %arg0, %c0_i32, %c0_i32_0 : i32, i32, i32
  }
}

module attributes {stable_mosaic.version = 11 : i64} {
  func.func @conv_in_relu_kernel(%arg0: i32, %arg1: memref<1x384x16xf32, #tpu.memory_space<vmem>>, %arg2: memref<32x384xf32, #tpu.memory_space<vmem>>, %arg3: memref<32x1xf32, #tpu.memory_space<vmem>>, %arg4: memref<1x32x16xf32, #tpu.memory_space<vmem>>) attributes {dimension_semantics = [#tpu.dimension_semantics<parallel>], iteration_bounds = array<i64: 2>, scalar_prefetch = 0 : i64, scratch_operands = 0 : i64, tpu.core_type = #tpu.core_type<tc>, window_params = [{transform_indices = @transform_0, window_bounds = array<i64: 1, 384, 16>}, {pipeline_mode = #tpu.pipeline_mode<synchronous>, transform_indices = @transform_1, window_bounds = array<i64: 32, 384>}, {pipeline_mode = #tpu.pipeline_mode<synchronous>, transform_indices = @transform_2, window_bounds = array<i64: 32, 1>}, {transform_indices = @transform_3, window_bounds = array<i64: 1, 32, 16>}]} {
    %c0 = arith.constant 0 : index
    %c0_0 = arith.constant 0 : index
    %0 = vector.load %arg2[%c0, %c0_0] : memref<32x384xf32, #tpu.memory_space<vmem>>, vector<32x384xf32>
    %c0_1 = arith.constant 0 : index
    %c0_2 = arith.constant 0 : index
    %c0_3 = arith.constant 0 : index
    %1 = vector.load %arg1[%c0_1, %c0_2, %c0_3] : memref<1x384x16xf32, #tpu.memory_space<vmem>>, vector<1x384x16xf32>
    %2 = vector.shape_cast %1 : vector<1x384x16xf32> to vector<384x16xf32>
    %cst = arith.constant dense<0.000000e+00> : vector<32x16xf32>
    %3 = tpu.matmul %0, %2, %cst {dimension_numbers = #tpu.dot_dimension_numbers<[1], [0], [0], [1], [0, 0, 1, 1], [], []>} : vector<32x384xf32>, vector<384x16xf32>, vector<32x16xf32> -> vector<32x16xf32>
    %c0_4 = arith.constant 0 : index
    %c0_5 = arith.constant 0 : index
    %4 = vector.load %arg3[%c0_4, %c0_5] : memref<32x1xf32, #tpu.memory_space<vmem>>, vector<32x1xf32>
    %5 = vector.broadcast %4 : vector<32x1xf32> to vector<32x16xf32>
    %6 = arith.addf %3, %5 : vector<32x16xf32>
    %cst_6 = arith.constant dense<0.000000e+00> : vector<32xf32>
    %7 = vector.multi_reduction <add>, %6, %cst_6 [1] : vector<32x16xf32> to vector<32xf32>
    %8 = vector.shape_cast %7 : vector<32xf32> to vector<32x1xf32>
    %cst_7 = arith.constant 1.600000e+01 : f32
    %9 = vector.broadcast %cst_7 : f32 to vector<32x1xf32>
    %10 = arith.divf %8, %9 : vector<32x1xf32>
    %11 = vector.broadcast %10 : vector<32x1xf32> to vector<32x16xf32>
    %12 = arith.subf %6, %11 : vector<32x16xf32>
    %13 = arith.mulf %12, %12 : vector<32x16xf32>
    %cst_8 = arith.constant dense<0.000000e+00> : vector<32xf32>
    %14 = vector.multi_reduction <add>, %13, %cst_8 [1] : vector<32x16xf32> to vector<32xf32>
    %15 = vector.shape_cast %14 : vector<32xf32> to vector<32x1xf32>
    %cst_9 = arith.constant 1.600000e+01 : f32
    %16 = vector.broadcast %cst_9 : f32 to vector<32x1xf32>
    %17 = arith.divf %15, %16 : vector<32x1xf32>
    %18 = vector.broadcast %10 : vector<32x1xf32> to vector<32x16xf32>
    %19 = arith.subf %6, %18 : vector<32x16xf32>
    %cst_10 = arith.constant 9.99999974E-6 : f32
    %20 = vector.broadcast %cst_10 : f32 to vector<32x1xf32>
    %21 = arith.addf %17, %20 : vector<32x1xf32>
    %22 = math.rsqrt %21 : vector<32x1xf32>
    %23 = vector.broadcast %22 : vector<32x1xf32> to vector<32x16xf32>
    %24 = arith.mulf %19, %23 : vector<32x16xf32>
    %cst_11 = arith.constant 0.000000e+00 : f32
    %25 = vector.broadcast %cst_11 : f32 to vector<32x16xf32>
    %26 = arith.maximumf %24, %25 : vector<32x16xf32>
    %c0_12 = arith.constant 0 : index
    %c0_13 = arith.constant 0 : index
    %c0_14 = arith.constant 0 : index
    %27 = vector.load %arg4[%c0_12, %c0_13, %c0_14] : memref<1x32x16xf32, #tpu.memory_space<vmem>>, vector<1x32x16xf32>
    %28 = vector.shape_cast %27 : vector<1x32x16xf32> to vector<32x16xf32>
    %29 = vector.shape_cast %26 : vector<32x16xf32> to vector<1x32x16xf32>
    tpu.vector_store %arg4[%c0_12, %c0_13, %c0_14], %29 {strides = array<i32>} : memref<1x32x16xf32, #tpu.memory_space<vmem>>, vector<1x32x16xf32>,
    return
  }
  func.func @transform_0(%arg0: i32) -> (i32, i32, i32) {
    %c0_i32 = arith.constant 0 : i32
    %c0_i32_0 = arith.constant 0 : i32
    %c0_i32_1 = arith.constant 0 : i32
    return %arg0, %c0_i32, %c0_i32_0 : i32, i32, i32
  }
  func.func @transform_1(%arg0: i32) -> (i32, i32) {
    %c0_i32 = arith.constant 0 : i32
    %c0_i32_0 = arith.constant 0 : i32
    %c0_i32_1 = arith.constant 0 : i32
    return %c0_i32, %c0_i32_0 : i32, i32
  }
  func.func @transform_2(%arg0: i32) -> (i32, i32) {
    %c0_i32 = arith.constant 0 : i32
    %c0_i32_0 = arith.constant 0 : i32
    %c0_i32_1 = arith.constant 0 : i32
    return %c0_i32, %c0_i32_0 : i32, i32
  }
  func.func @transform_3(%arg0: i32) -> (i32, i32, i32) {
    %c0_i32 = arith.constant 0 : i32
    %c0_i32_0 = arith.constant 0 : i32
    %c0_i32_1 = arith.constant 0 : i32
    return %arg0, %c0_i32, %c0_i32_0 : i32, i32, i32
  }
}

module attributes {stable_mosaic.version = 11 : i64} {
  func.func @conv_in_add_kernel(%arg0: i32, %arg1: memref<1x384x16xf32, #tpu.memory_space<vmem>>, %arg2: memref<32x384xf32, #tpu.memory_space<vmem>>, %arg3: memref<32x1xf32, #tpu.memory_space<vmem>>, %arg4: memref<1x32x16xf32, #tpu.memory_space<vmem>>, %arg5: memref<1x32x16xf32, #tpu.memory_space<vmem>>) attributes {dimension_semantics = [#tpu.dimension_semantics<parallel>], iteration_bounds = array<i64: 2>, scalar_prefetch = 0 : i64, scratch_operands = 0 : i64, tpu.core_type = #tpu.core_type<tc>, window_params = [{transform_indices = @transform_0, window_bounds = array<i64: 1, 384, 16>}, {pipeline_mode = #tpu.pipeline_mode<synchronous>, transform_indices = @transform_1, window_bounds = array<i64: 32, 384>}, {pipeline_mode = #tpu.pipeline_mode<synchronous>, transform_indices = @transform_2, window_bounds = array<i64: 32, 1>}, {transform_indices = @transform_3, window_bounds = array<i64: 1, 32, 16>}, {transform_indices = @transform_4, window_bounds = array<i64: 1, 32, 16>}]} {
    %c0 = arith.constant 0 : index
    %c0_0 = arith.constant 0 : index
    %0 = vector.load %arg2[%c0, %c0_0] : memref<32x384xf32, #tpu.memory_space<vmem>>, vector<32x384xf32>
    %c0_1 = arith.constant 0 : index
    %c0_2 = arith.constant 0 : index
    %c0_3 = arith.constant 0 : index
    %1 = vector.load %arg1[%c0_1, %c0_2, %c0_3] : memref<1x384x16xf32, #tpu.memory_space<vmem>>, vector<1x384x16xf32>
    %2 = vector.shape_cast %1 : vector<1x384x16xf32> to vector<384x16xf32>
    %cst = arith.constant dense<0.000000e+00> : vector<32x16xf32>
    %3 = tpu.matmul %0, %2, %cst {dimension_numbers = #tpu.dot_dimension_numbers<[1], [0], [0], [1], [0, 0, 1, 1], [], []>} : vector<32x384xf32>, vector<384x16xf32>, vector<32x16xf32> -> vector<32x16xf32>
    %c0_4 = arith.constant 0 : index
    %c0_5 = arith.constant 0 : index
    %4 = vector.load %arg3[%c0_4, %c0_5] : memref<32x1xf32, #tpu.memory_space<vmem>>, vector<32x1xf32>
    %5 = vector.broadcast %4 : vector<32x1xf32> to vector<32x16xf32>
    %6 = arith.addf %3, %5 : vector<32x16xf32>
    %cst_6 = arith.constant dense<0.000000e+00> : vector<32xf32>
    %7 = vector.multi_reduction <add>, %6, %cst_6 [1] : vector<32x16xf32> to vector<32xf32>
    %8 = vector.shape_cast %7 : vector<32xf32> to vector<32x1xf32>
    %cst_7 = arith.constant 1.600000e+01 : f32
    %9 = vector.broadcast %cst_7 : f32 to vector<32x1xf32>
    %10 = arith.divf %8, %9 : vector<32x1xf32>
    %11 = vector.broadcast %10 : vector<32x1xf32> to vector<32x16xf32>
    %12 = arith.subf %6, %11 : vector<32x16xf32>
    %13 = arith.mulf %12, %12 : vector<32x16xf32>
    %cst_8 = arith.constant dense<0.000000e+00> : vector<32xf32>
    %14 = vector.multi_reduction <add>, %13, %cst_8 [1] : vector<32x16xf32> to vector<32xf32>
    %15 = vector.shape_cast %14 : vector<32xf32> to vector<32x1xf32>
    %cst_9 = arith.constant 1.600000e+01 : f32
    %16 = vector.broadcast %cst_9 : f32 to vector<32x1xf32>
    %17 = arith.divf %15, %16 : vector<32x1xf32>
    %18 = vector.broadcast %10 : vector<32x1xf32> to vector<32x16xf32>
    %19 = arith.subf %6, %18 : vector<32x16xf32>
    %cst_10 = arith.constant 9.99999974E-6 : f32
    %20 = vector.broadcast %cst_10 : f32 to vector<32x1xf32>
    %21 = arith.addf %17, %20 : vector<32x1xf32>
    %22 = math.rsqrt %21 : vector<32x1xf32>
    %23 = vector.broadcast %22 : vector<32x1xf32> to vector<32x16xf32>
    %24 = arith.mulf %19, %23 : vector<32x16xf32>
    %c0_11 = arith.constant 0 : index
    %c0_12 = arith.constant 0 : index
    %c0_13 = arith.constant 0 : index
    %25 = vector.load %arg4[%c0_11, %c0_12, %c0_13] : memref<1x32x16xf32, #tpu.memory_space<vmem>>, vector<1x32x16xf32>
    %26 = vector.shape_cast %25 : vector<1x32x16xf32> to vector<32x16xf32>
    %27 = arith.addf %24, %26 : vector<32x16xf32>
    %c0_14 = arith.constant 0 : index
    %c0_15 = arith.constant 0 : index
    %c0_16 = arith.constant 0 : index
    %28 = vector.load %arg5[%c0_14, %c0_15, %c0_16] : memref<1x32x16xf32, #tpu.memory_space<vmem>>, vector<1x32x16xf32>
    %29 = vector.shape_cast %28 : vector<1x32x16xf32> to vector<32x16xf32>
    %30 = vector.shape_cast %27 : vector<32x16xf32> to vector<1x32x16xf32>
    tpu.vector_store %arg5[%c0_14, %c0_15, %c0_16], %30 {strides = array<i32>} : memref<1x32x16xf32, #tpu.memory_space<vmem>>, vector<1x32x16xf32>,
    return
  }
  func.func @transform_0(%arg0: i32) -> (i32, i32, i32) {
    %c0_i32 = arith.constant 0 : i32
    %c0_i32_0 = arith.constant 0 : i32
    %c0_i32_1 = arith.constant 0 : i32
    return %arg0, %c0_i32, %c0_i32_0 : i32, i32, i32
  }
  func.func @transform_1(%arg0: i32) -> (i32, i32) {
    %c0_i32 = arith.constant 0 : i32
    %c0_i32_0 = arith.constant 0 : i32
    %c0_i32_1 = arith.constant 0 : i32
    return %c0_i32, %c0_i32_0 : i32, i32
  }
  func.func @transform_2(%arg0: i32) -> (i32, i32) {
    %c0_i32 = arith.constant 0 : i32
    %c0_i32_0 = arith.constant 0 : i32
    %c0_i32_1 = arith.constant 0 : i32
    return %c0_i32, %c0_i32_0 : i32, i32
  }
  func.func @transform_3(%arg0: i32) -> (i32, i32, i32) {
    %c0_i32 = arith.constant 0 : i32
    %c0_i32_0 = arith.constant 0 : i32
    %c0_i32_1 = arith.constant 0 : i32
    return %arg0, %c0_i32, %c0_i32_0 : i32, i32, i32
  }
  func.func @transform_4(%arg0: i32) -> (i32, i32, i32) {
    %c0_i32 = arith.constant 0 : i32
    %c0_i32_0 = arith.constant 0 : i32
    %c0_i32_1 = arith.constant 0 : i32
    return %arg0, %c0_i32, %c0_i32_0 : i32, i32, i32
  }
}

</mosaic_0001>

<bundles_post_ra>
// kernel: base_encoder_forward.7
= control target key start
LH: loop header
LB: loop body
LE: loop exit
PB: predicated region body
PF: predicated region fallthrough
CT: control target
= control target key end

     0   :  { %s472_s12 = smov 0   ;;  %s568_s0 = inlined_call_operand.vmem [shape: f32[2,256,256], index: 0, kind: input, shape index: {}]   ;;  %s569_s1 = inlined_call_operand.vmem [shape: f32[8,256], index: 1, kind: input, shape index: {}]   ;;  %s570_s2 = inlined_call_operand.vmem [shape: f32[8,1], index: 2, kind: input, shape index: {}]   ;;  %s571_s3 = inlined_call_operand.vmem [shape: f32[2,8,256], index: 3, kind: output, shape index: {}]  }
   0x1 LB: > { %s414_s13 = sadd.s32 4294967295, %s448_s12   ;;  %p418_p0 = scmp.ge.s32.totalorder %s448_s12, 1  ;;  %s448_s12 = sphi %s472_s12, %s13_s12  }
   0x2   : > { %p137_p1 = scmp.lt.s32.totalorder %s448_s12, 3 }
   0x4   : > { %p138_p2 = pnand %p418_p0, %p137_p1 }
   0x5   : > { %p161_p3 = scmp.lt.s32.totalorder (!%p138_p2), %s414_s13, 1 }
   0x6   : > { %141 = sbr.rel (%p138_p2) target bundleno = 452 (0x1c4), region = 32 }
   0xb   : > { %s573_s13 = smov (!%p161_p3, %s414_s13), 1  ;;  %v171_v61 = vld [vmem:[%s569_s1] sm:$0xff]  ;;  %v172_v62 = vld [vmem:[%s569_s1 + $0x8] sm:$0xff] }
   0xc   : > { %s425_s14 = sshll.u32 %s573_s13, 9  ;;  %s426_s24 = sshll.u32 %s573_s13, 4 }
   0xd   : > { %s486_s17 = scalar_lea.vmem %s568_s0, %s425_s14  ;;  %s170_s27 = scalar_lea.vmem %s571_s3, %s426_s24 }
   0xe   : > { %v204_v0 = vld [vmem:[%s486_s17 + $0xf8] sm:$0xff]  ;;  %v202_v1 = vld [vmem:[%s486_s17 + $0xe8] sm:$0xff]  ;;  %v203_v4 = vld [vmem:[%s486_s17 + $0xf0] sm:$0xff] }
   0xf   : > { %v236_v2 = vld [vmem:[%s486_s17 + $0x1f8] sm:$0xff]  ;;  %283 = vmatpush.msra.mxu2 %v204_v0  ;;  %v234_v3 = vld [vmem:[%s486_s17 + $0x1e8] sm:$0xff]  ;;  %243 = vmatpush.msra.mxu0 %v203_v4  ;;  %v201_v7 = vld [vmem:[%s486_s17 + $0xe0] sm:$0xff] }
  0x10   : > { %303 = vmatpush.msra.mxu3 %v236_v2  ;;  %v200_v5 = vld [vmem:[%s486_s17 + $0xd8] sm:$0xff]  ;;  %v198_v8 = vld [vmem:[%s486_s17 + $0xc8] sm:$0xff]  ;;  %v235_v9 = vld [vmem:[%s486_s17 + $0x1f0] sm:$0xff] }
  0x11   : > { %v232_v6 = vld [vmem:[%s486_s17 + $0x1d8] sm:$0xff]  ;;  %284 = vmatpush.msra.mxu2 %v202_v1  ;;  %244 = vmatpush.msra.mxu0 %v201_v7  ;;  %v230_v10 = vld [vmem:[%s486_s17 + $0x1c8] sm:$0xff]  ;;  %v199_v11 = vld [vmem:[%s486_s17 + $0xd0] sm:$0xff] }
  0x12   : > { %304 = vmatpush.msra.mxu3 %v234_v3  ;;  %263 = vmatpush.msra.mxu1 %v235_v9  ;;  %v233_v12 = vld [vmem:[%s486_s17 + $0x1e0] sm:$0xff]  ;;  %v231_v14 = vld [vmem:[%s486_s17 + $0x1d0] sm:$0xff]  ;;  %v196_v15 = vld [vmem:[%s486_s17 + $0xb8] sm:$0xff]  ;;  %v450_v3 = vmov 0  }
  0x13   : > { %285 = vmatpush.msra.mxu2 %v200_v5  ;;  %v197_v13 = vld [vmem:[%s486_s17 + $0xc0] sm:$0xff]  ;;  %245 = vmatpush.msra.mxu0 %v199_v11  ;;  %v228_v16 = vld [vmem:[%s486_s17 + $0x1b8] sm:$0xff]  ;;  %v195_v17 = vld [vmem:[%s486_s17 + $0xb0] sm:$0xff] }
  0x14   : > { %305 = vmatpush.msra.mxu3 %v232_v6  ;;  %264 = vmatpush.msra.mxu1 %v233_v12  ;;  %v229_v18 = vld [vmem:[%s486_s17 + $0x1c0] sm:$0xff]  ;;  %v194_v19 = vld [vmem:[%s486_s17 + $0xa8] sm:$0xff]  ;;  %v227_v22 = vld [vmem:[%s486_s17 + $0x1b0] sm:$0xff] }
  0x15   : > { %286 = vmatpush.msra.mxu2 %v198_v8  ;;  %246 = vmatpush.msra.mxu0 %v197_v13  ;;  %v226_v20 = vld [vmem:[%s486_s17 + $0x1a8] sm:$0xff]  ;;  %v193_v21 = vld [vmem:[%s486_s17 + $0xa0] sm:$0xff]  ;;  %v192_v23 = vld [vmem:[%s486_s17 + $0x98] sm:$0xff] }
  0x16   : > { %306 = vmatpush.msra.mxu3 %v230_v10  ;;  %265 = vmatpush.msra.mxu1 %v231_v14  ;;  %v224_v24 = vld [vmem:[%s486_s17 + $0x198] sm:$0xff]  ;;  %v191_v25 = vld [vmem:[%s486_s17 + $0x90] sm:$0xff]  ;;  %v225_v26 = vld [vmem:[%s486_s17 + $0x1a0] sm:$0xff]  ;;  %v451_v14 = vmov 256.0  }
  0x17   : > { %287 = vmatpush.msra.mxu2 %v196_v15  ;;  %247 = vmatpush.msra.mxu0 %v195_v17  ;;  %v190_v27 = vld [vmem:[%s486_s17 + $0x88] sm:$0xff]  ;;  %v189_v29 = vld [vmem:[%s486_s17 + $0x80] sm:$0xff]  ;;  %v223_v30 = vld [vmem:[%s486_s17 + $0x190] sm:$0xff]  ;;  %438 = vrcp.f32 %v451_v14 }
  0x18   : > { %307 = vmatpush.msra.mxu3 %v228_v16  ;;  %266 = vmatpush.msra.mxu1 %v229_v18  ;;  %v222_v28 = vld [vmem:[%s486_s17 + $0x188] sm:$0xff]  ;;  %v188_v31 = vld [vmem:[%s486_s17 + $0x78] sm:$0xff]  ;;  %v187_v33 = vld [vmem:[%s486_s17 + $0x70] sm:$0xff] }
  0x19   : > { %288 = vmatpush.msra.mxu2 %v194_v19  ;;  %248 = vmatpush.msra.mxu0 %v193_v21  ;;  %v220_v32 = vld [vmem:[%s486_s17 + $0x178] sm:$0xff]  ;;  %v221_v34 = vld [vmem:[%s486_s17 + $0x180] sm:$0xff]  ;;  %v186_v35 = vld [vmem:[%s486_s17 + $0x68] sm:$0xff] }
  0x1a   : > { %308 = vmatpush.msra.mxu3 %v226_v20  ;;  %267 = vmatpush.msra.mxu1 %v227_v22  ;;  %v218_v36 = vld [vmem:[%s486_s17 + $0x168] sm:$0xff]  ;;  %v185_v37 = vld [vmem:[%s486_s17 + $0x60] sm:$0xff]  ;;  %v219_v38 = vld [vmem:[%s486_s17 + $0x170] sm:$0xff] }
  0x1b   : > { %289 = vmatpush.msra.mxu2 %v192_v23  ;;  %249 = vmatpush.msra.mxu0 %v191_v25  ;;  %v184_v39 = vld [vmem:[%s486_s17 + $0x58] sm:$0xff]  ;;  %v183_v41 = vld [vmem:[%s486_s17 + $0x50] sm:$0xff]  ;;  %v217_v42 = vld [vmem:[%s486_s17 + $0x160] sm:$0xff] }
  0x1c   : > { %309 = vmatpush.msra.mxu3 %v224_v24  ;;  %268 = vmatpush.msra.mxu1 %v225_v26  ;;  %v216_v40 = vld [vmem:[%s486_s17 + $0x158] sm:$0xff]  ;;  %v182_v43 = vld [vmem:[%s486_s17 + $0x48] sm:$0xff]  ;;  %v181_v45 = vld [vmem:[%s486_s17 + $0x40] sm:$0xff] }
  0x1d   : > { %290 = vmatpush.msra.mxu2 %v190_v27  ;;  %250 = vmatpush.msra.mxu0 %v189_v29  ;;  %v214_v44 = vld [vmem:[%s486_s17 + $0x148] sm:$0xff]  ;;  %v215_v46 = vld [vmem:[%s486_s17 + $0x150] sm:$0xff]  ;;  %v180_v47 = vld [vmem:[%s486_s17 + $0x38] sm:$0xff]  ;;  %v439_v15 = vpop.eup %438 }
  0x1e   : > { %310 = vmatpush.msra.mxu3 %v222_v28  ;;  %269 = vmatpush.msra.mxu1 %v223_v30  ;;  %v212_v48 = vld [vmem:[%s486_s17 + $0x138] sm:$0xff]  ;;  %v179_v49 = vld [vmem:[%s486_s17 + $0x30] sm:$0xff]  ;;  %v213_v50 = vld [vmem:[%s486_s17 + $0x140] sm:$0xff]  ;;  %v327_v16 = vmul.f32 256.0, %v439_v15  ;;  %vm331_vm0 = vweird.f32 %v439_v15 }
  0x1f   : > { %291 = vmatpush.msra.mxu2 %v188_v31  ;;  %251 = vmatpush.msra.mxu0 %v187_v33  ;;  %v178_v51 = vld [vmem:[%s486_s17 + $0x28] sm:$0xff]  ;;  %v177_v53 = vld [vmem:[%s486_s17 + $0x20] sm:$0xff]  ;;  %v211_v54 = vld [vmem:[%s486_s17 + $0x130] sm:$0xff] }
  0x20   : > { %311 = vmatpush.msra.mxu3 %v220_v32  ;;  %270 = vmatpush.msra.mxu1 %v221_v34  ;;  %v210_v52 = vld [vmem:[%s486_s17 + $0x128] sm:$0xff]  ;;  %v176_v55 = vld [vmem:[%s486_s17 + $0x18] sm:$0xff]  ;;  %v175_v57 = vld [vmem:[%s486_s17 + $0x10] sm:$0xff]  ;;  %v328_v17 = vsub.f32 1.0, %v327_v16 }
  0x21   : > { %292 = vmatpush.msra.mxu2 %v186_v35  ;;  %252 = vmatpush.msra.mxu0 %v185_v37  ;;  %v208_v56 = vld [vmem:[%s486_s17 + $0x118] sm:$0xff]  ;;  %v209_v58 = vld [vmem:[%s486_s17 + $0x120] sm:$0xff]  ;;  %v174_v59 = vld [vmem:[%s486_s17 + $0x8] sm:$0xff] }
  0x22   : > { %312 = vmatpush.msra.mxu3 %v218_v36  ;;  %271 = vmatpush.msra.mxu1 %v219_v38  ;;  %v206_v60 = vld [vmem:[%s486_s17 + $0x108] sm:$0xff]  ;;  %v173_v63 = vld [vmem:[%s486_s17] sm:$0xff]  ;;  %v207_v0 = vld [vmem:[%s486_s17 + $0x110] sm:$0xff]  ;;  %v329_v18 = vmul.f32 %v439_v15, %v328_v17 }
  0x23   : > { %293 = vmatpush.msra.mxu2 %v184_v39  ;;  %253 = vmatpush.msra.mxu0 %v183_v41  ;;  %v205_v1 = vld [vmem:[%s486_s17 + $0x100] sm:$0xff] }
  0x24   : > { %313 = vmatpush.msra.mxu3 %v216_v40  ;;  %272 = vmatpush.msra.mxu1 %v217_v42  ;;  %v237_v2 = vld [vmem:[%s570_s2] sm:$0xff]  ;;  %v330_v19 = vadd.f32 %v439_v15, %v329_v18 }
  0x25   : > { %294 = vmatpush.msra.mxu2 %v182_v43  ;;  %254 = vmatpush.msra.mxu0 %v181_v45 }
  0x26   : > { %314 = vmatpush.msra.mxu3 %v214_v44  ;;  %273 = vmatpush.msra.mxu1 %v215_v46  ;;  %v332_v20 = vsel %vm331_vm0, %v439_v15, %v330_v19 }
  0x27   : > { %295 = vmatpush.msra.mxu2 %v180_v47  ;;  %255 = vmatpush.msra.mxu0 %v179_v49 }
  0x28   : > { %315 = vmatpush.msra.mxu3 %v212_v48  ;;  %274 = vmatpush.msra.mxu1 %v213_v50 }
  0x29   : > { %296 = vmatpush.msra.mxu2 %v178_v51  ;;  %256 = vmatpush.msra.mxu0 %v177_v53 }
  0x2a   : > { %316 = vmatpush.msra.mxu3 %v210_v52  ;;  %275 = vmatpush.msra.mxu1 %v211_v54 }
  0x2b   : > { %297 = vmatpush.msra.mxu2 %v176_v55  ;;  %257 = vmatpush.msra.mxu0 %v175_v57 }
  0x2c   : > { %317 = vmatpush.msra.mxu3 %v208_v56  ;;  %276 = vmatpush.msra.mxu1 %v209_v58 }
  0x2d   : > { %298 = vmatpush.msra.mxu2 %v174_v59  ;;  %258 = vmatpush.msra.mxu0 %v173_v63 }
  0x2e   : > { %318 = vmatpush.msra.mxu3 %v206_v60  ;;  %299 = vmatmul.f32.vlgmr.msra.gmra.mxu2 %v171_v61 }
  0x2f   : > { %319 = vmatmul.f32.vlgmr.msra.gmra.mxu3 %v172_v62  ;;  %277 = vmatpush.msra.mxu1 %v207_v0 }
  0x30   : > { %259 = vmatmul.f32.vlgmr.msra.gmra.mxu0 %v171_v61  ;;  %437 = vset.pattern.permute.xlu0 %v450_v3 }
  0x31   : > { %278 = vmatpush.msra.mxu1 %v205_v1  ;;  %240 = vperm.xlu0 %437, %v237_v2  }
  0x32   : > { %279 = vmatmul.f32.vlgmr.msra.gmra.mxu1 %v172_v62 }
  0xa3   : > { %v241_v4 = vpop.permute.xlu0 %240 }
  0xad   : > { %v260_v5 = vpop.f32.mrf.mxu0 }
  0xae   : > { %v261_v6 = vadd.f32 %v260_v5, %v241_v4 }
  0xaf   : > { %v280_v7 = vpop.f32.mrf.mxu1 }
  0xb0   : > { %v281_v11 = vadd.f32 %v280_v7, %v261_v6 }
  0xb1   : > { %v300_v8 = vpop.f32.mrf.mxu2 }
  0xb2   : > { %v320_v9 = vpop.f32.mrf.mxu3  ;;  %v301_v10 = vadd.f32 %v300_v8, %v241_v4 }
  0xb4   : > { %v321_v12 = vadd.f32 %v320_v9, %v301_v10 }
  0xb6   : > { %v323_v13 = vadd.f32 %v321_v12, %v281_v11 }
  0xb8   : > { %324 = vadd.xlane.f32.xlu0 %v323_v13 }
 0x12b   : > { %v325_v21 = vpop.xlane.xlu0 %324 }
 0x12c   : > { %v333_v22 = vmul.f32 %v332_v20, %v325_v21 }
 0x12e   : > { %v334_v23 = vsub.f32 %v281_v11, %v333_v22  ;;  %v335_v24 = vsub.f32 %v321_v12, %v333_v22 }
 0x130   : > { %v336_v25 = vmul.f32 %v334_v23, %v334_v23  ;;  %v337_v26 = vmul.f32 %v335_v24, %v335_v24 }
 0x132   : > { %v338_v27 = vadd.f32 %v337_v26, %v336_v25 }
 0x134   : > { %339 = vadd.xlane.f32.xlu1 %v338_v27 }
 0x1a7   : > { %v340_v28 = vpop.xlane.xlu1 %339 }
 0x1a8   : > { %v341_v29 = vmul.f32 %v340_v28, %v332_v20 }
 0x1aa   : > { %v342_v30 = vadd.f32 1e-05, %v341_v29 }
 0x1ac   : > { %440 = vrsqrt.f32 %v342_v30  ;;  %vm349_vm2 = vweird.f32 %v342_v30 }
 0x1b2   : > { %v441_v31 = vpop.eup %440 }
 0x1b3   : > { %v344_v32 = vmul.f32 %v441_v31, %v342_v30  ;;  %vm350_vm1 = vweird.f32 %v441_v31 }
 0x1b4   : > { %vm351_vm3 = vmor %vm349_vm2, %vm350_vm1 }
 0x1b5   : > { %v345_v33 = vmul.f32 %v441_v31, %v344_v32 }
 0x1b7   : > { %v346_v34 = vmul.f32 0.5, %v345_v33 }
 0x1b9   : > { %v347_v35 = vsub.f32 1.5, %v346_v34 }
 0x1bb   : > { %v348_v36 = vmul.f32 %v441_v31, %v347_v35 }
 0x1bd   : > { %v352_v37 = vsel %vm351_vm3, %v441_v31, %v348_v36 }
 0x1be   : > { %v353_v38 = vmul.f32 %v352_v37, %v334_v23  ;;  %v354_v39 = vmul.f32 %v352_v37, %v335_v24 }
 0x1c0   : > { %v355_v40 = vmax.f32 %v353_v38, 0.0  ;;  %v356_v41 = vmax.f32 %v354_v39, 0.0 }
 0x1c2   : > { %357 = vst [vmem:[%s170_s27] sm:$0xff] %v355_v40 }
 0x1c3   : > { %358 = vst [vmem:[%s170_s27 + $0x8] sm:$0xff] %v356_v41 }
 0x1c4 PF: > { %s13_s12 = sadd.s32 1, %s448_s12  }
 0x1c5   : > { %p10_p4 = scmp.ge.s32.totalorder %s13_s12, 4  }
 0x1c7   :  { %12 = sbr.rel (!%p10_p4) target bundleno = 1 (0x1), region = 62 }

// kernel: base_encoder_forward.8
= control target key start
LH: loop header
LB: loop body
LE: loop exit
PB: predicated region body
PF: predicated region fallthrough
CT: control target
= control target key end

     0   :  { %s411_s12 = smov 0   ;;  %s468_s0 = inlined_call_operand.vmem [shape: f32[2,128,64], index: 0, kind: input, shape index: {}]   ;;  %s469_s1 = inlined_call_operand.vmem [shape: f32[16,128], index: 1, kind: input, shape index: {}]   ;;  %s470_s2 = inlined_call_operand.vmem [shape: f32[16,1], index: 2, kind: input, shape index: {}]   ;;  %s471_s3 = inlined_call_operand.vmem [shape: f32[2,16,64], index: 3, kind: output, shape index: {}]  }
   0x1 LB: > { %s335_s13 = sadd.s32 4294967295, %s387_s12   ;;  %p339_p0 = scmp.ge.s32.totalorder %s387_s12, 1  ;;  %s387_s12 = sphi %s411_s12, %s13_s12  }
   0x2   : > { %p137_p1 = scmp.lt.s32.totalorder %s387_s12, 3 }
   0x4   : > { %p138_p2 = pnand %p339_p0, %p137_p1 }
   0x5   : > { %p161_p3 = scmp.lt.s32.totalorder (!%p138_p2), %s335_s13, 1 }
   0x6   : > { %141 = sbr.rel (%p138_p2) target bundleno = 449 (0x1c1), region = 32 }
   0xb   : > { %s473_s13 = smov (!%p161_p3, %s335_s13), 1  ;;  %v389_v3 = vmov 0   ;;  %v189_v5 = vld [vmem:[%s470_s2] sm:$0xff]  ;;  %v190_v9 = vld [vmem:[%s470_s2 + $0x8] sm:$0xff]  ;;  %vm224_vm0 = vcmask 523264   ;;  %v390_v29 = vmov 64.0  }
   0xc   : > { %s346_s14 = sshll.u32 %s473_s13, 7  ;;  %374 = vset.pattern.permute.xlu0 %v389_v3  ;;  %v171_v19 = vld [vmem:[%s469_s1] sm:$0xff]  ;;  %v172_v20 = vld [vmem:[%s469_s1 + $0x8] sm:$0xff]  ;;  %375 = vrcp.f32 %v390_v29  ;;  %s347_s26 = sshll.u32 %s473_s13, 4 }
   0xd   : > { %s425_s17 = scalar_lea.vmem %s468_s0, %s346_s14  ;;  %193 = vperm.xlu0 %374, %v189_v5   ;;  %s170_s29 = scalar_lea.vmem %s471_s3, %s347_s26 }
   0xe   : > { %v188_v0 = vld [vmem:[%s425_s17 + $0x78] sm:$0xff]  ;;  %v187_v1 = vld [vmem:[%s425_s17 + $0x70] sm:$0xff]  ;;  %v186_v2 = vld [vmem:[%s425_s17 + $0x68] sm:$0xff] }
   0xf   : > { %201 = vmatpush.msra.mxu0 %v188_v0  ;;  %348 = vmatpush.msra.mxu1 %v188_v0  ;;  %v185_v4 = vld [vmem:[%s425_s17 + $0x60] sm:$0xff]  ;;  %v184_v6 = vld [vmem:[%s425_s17 + $0x58] sm:$0xff]  ;;  %v183_v7 = vld [vmem:[%s425_s17 + $0x50] sm:$0xff] }
  0x10   : > { %v182_v8 = vld [vmem:[%s425_s17 + $0x48] sm:$0xff]  ;;  %v181_v10 = vld [vmem:[%s425_s17 + $0x40] sm:$0xff]  ;;  %v180_v11 = vld [vmem:[%s425_s17 + $0x38] sm:$0xff] }
  0x11   : > { %202 = vmatpush.msra.mxu0 %v187_v1  ;;  %349 = vmatpush.msra.mxu1 %v187_v1  ;;  %v179_v12 = vld [vmem:[%s425_s17 + $0x30] sm:$0xff]  ;;  %v178_v13 = vld [vmem:[%s425_s17 + $0x28] sm:$0xff]  ;;  %v177_v14 = vld [vmem:[%s425_s17 + $0x20] sm:$0xff] }
  0x12   : > { %v176_v15 = vld [vmem:[%s425_s17 + $0x18] sm:$0xff]  ;;  %v175_v16 = vld [vmem:[%s425_s17 + $0x10] sm:$0xff]  ;;  %v174_v17 = vld [vmem:[%s425_s17 + $0x8] sm:$0xff]  ;;  %v376_v30 = vpop.eup %375 }
  0x13   : > { %203 = vmatpush.msra.mxu0 %v186_v2  ;;  %350 = vmatpush.msra.mxu1 %v186_v2  ;;  %v173_v18 = vld [vmem:[%s425_s17] sm:$0xff]  ;;  %v232_v31 = vmul.f32 64.0, %v376_v30  ;;  %vm236_vm1 = vweird.f32 %v376_v30 }
  0x15   : > { %204 = vmatpush.msra.mxu0 %v185_v4  ;;  %351 = vmatpush.msra.mxu1 %v185_v4  ;;  %v233_v32 = vsub.f32 1.0, %v232_v31 }
  0x16   : > { %198 = vperm.xlu0 %374, %v190_v9  }
  0x17   : > { %205 = vmatpush.msra.mxu0 %v184_v6  ;;  %352 = vmatpush.msra.mxu1 %v184_v6  ;;  %v234_v33 = vmul.f32 %v376_v30, %v233_v32 }
  0x19   : > { %206 = vmatpush.msra.mxu0 %v183_v7  ;;  %353 = vmatpush.msra.mxu1 %v183_v7  ;;  %v235_v34 = vadd.f32 %v376_v30, %v234_v33 }
  0x1b   : > { %207 = vmatpush.msra.mxu0 %v182_v8  ;;  %354 = vmatpush.msra.mxu1 %v182_v8  ;;  %v237_v35 = vsel %vm236_vm1, %v376_v30, %v235_v34 }
  0x1d   : > { %208 = vmatpush.msra.mxu0 %v181_v10  ;;  %355 = vmatpush.msra.mxu1 %v181_v10 }
  0x1f   : > { %209 = vmatpush.msra.mxu0 %v180_v11  ;;  %356 = vmatpush.msra.mxu1 %v180_v11 }
  0x21   : > { %210 = vmatpush.msra.mxu0 %v179_v12  ;;  %357 = vmatpush.msra.mxu1 %v179_v12 }
  0x23   : > { %211 = vmatpush.msra.mxu0 %v178_v13  ;;  %358 = vmatpush.msra.mxu1 %v178_v13 }
  0x25   : > { %212 = vmatpush.msra.mxu0 %v177_v14  ;;  %359 = vmatpush.msra.mxu1 %v177_v14 }
  0x27   : > { %213 = vmatpush.msra.mxu0 %v176_v15  ;;  %360 = vmatpush.msra.mxu1 %v176_v15 }
  0x29   : > { %214 = vmatpush.msra.mxu0 %v175_v16  ;;  %361 = vmatpush.msra.mxu1 %v175_v16 }
  0x2b   : > { %215 = vmatpush.msra.mxu0 %v174_v17  ;;  %362 = vmatpush.msra.mxu1 %v174_v17 }
  0x2d   : > { %216 = vmatpush.msra.mxu0 %v173_v18  ;;  %363 = vmatpush.msra.mxu1 %v173_v18 }
  0x2e   : > { %217 = vmatmul.f32.vlgmr.msra.gmra.mxu0 %v171_v19  ;;  %220 = vmatmul.f32.vlgmr.msra.gmra.mxu1 %v172_v20 }
  0x7f   : > { %v194_v21 = vpop.permute.xlu0 %193 }
  0x88   : > { %v199_v25 = vpop.permute.xlu0 %198 }
  0xab   : > { %v218_v22 = vpop.f32.mrf.mxu0  ;;  %v221_v26 = vpop.f32.mrf.mxu1 }
  0xac   : > { %v219_v23 = vadd.f32 %v218_v22, %v194_v21  ;;  %v222_v27 = vadd.f32 %v221_v26, %v199_v25 }
  0xae   : > { %v225_v24 = vsel %vm224_vm0, %v219_v23, 0.0  ;;  %v228_v28 = vsel %vm224_vm0, %v222_v27, 0.0 }
  0xaf   : > { %226 = vadd.xlane.f32.xlu1 %v225_v24 }
  0xb7   : > { %229 = vadd.xlane.f32.xlu1 %v228_v28 }
 0x122   : > { %v227_v36 = vpop.xlane.xlu1 %226 }
 0x123   : > { %v238_v37 = vmul.f32 %v237_v35, %v227_v36 }
 0x125   : > { %v240_v38 = vsub.f32 %v219_v23, %v238_v37 }
 0x127   : > { %v242_v39 = vmul.f32 %v240_v38, %v240_v38 }
 0x129   : > { %v244_v40 = vsel %vm224_vm0, %v242_v39, 0.0 }
 0x12a   : > { %245 = vadd.xlane.f32.xlu2 %v244_v40  ;;  %v230_v41 = vpop.xlane.xlu1 %229 }
 0x12b   : > { %v239_v42 = vmul.f32 %v237_v35, %v230_v41 }
 0x12d   : > { %v241_v43 = vsub.f32 %v222_v27, %v239_v42 }
 0x12f   : > { %v243_v44 = vmul.f32 %v241_v43, %v241_v43 }
 0x131   : > { %v247_v45 = vsel %vm224_vm0, %v243_v44, 0.0 }
 0x132   : > { %248 = vadd.xlane.f32.xlu2 %v247_v45 }
 0x19d   : > { %v246_v46 = vpop.xlane.xlu2 %245 }
 0x19e   : > { %v250_v47 = vmul.f32 %v246_v46, %v237_v35 }
 0x1a0   : > { %v252_v48 = vadd.f32 1e-05, %v250_v47 }
 0x1a2   : > { %377 = vrsqrt.f32 %v252_v48  ;;  %vm260_vm3 = vweird.f32 %v252_v48 }
 0x1a5   : > { %v249_v49 = vpop.xlane.xlu2 %248 }
 0x1a6   : > { %v251_v50 = vmul.f32 %v249_v49, %v237_v35 }
 0x1a8   : > { %v378_v51 = vpop.eup %377  ;;  %v253_v52 = vadd.f32 1e-05, %v251_v50 }
 0x1a9   : > { %v255_v53 = vmul.f32 %v378_v51, %v252_v48  ;;  %vm261_vm2 = vweird.f32 %v378_v51 }
 0x1aa   : > { %379 = vrsqrt.f32 %v253_v52  ;;  %vm262_vm4 = vmor %vm260_vm3, %vm261_vm2  ;;  %vm270_vm6 = vweird.f32 %v253_v52 }
 0x1ab   : > { %v256_v54 = vmul.f32 %v378_v51, %v255_v53 }
 0x1ad   : > { %v257_v55 = vmul.f32 0.5, %v256_v54 }
 0x1af   : > { %v258_v56 = vsub.f32 1.5, %v257_v55 }
 0x1b0   : > { %v380_v57 = vpop.eup %379 }
 0x1b1   : > { %v259_v58 = vmul.f32 %v378_v51, %v258_v56  ;;  %v265_v59 = vmul.f32 %v380_v57, %v253_v52  ;;  %vm271_vm5 = vweird.f32 %v380_v57 }
 0x1b2   : > { %vm272_vm7 = vmor %vm270_vm6, %vm271_vm5 }
 0x1b3   : > { %v263_v60 = vsel %vm262_vm4, %v378_v51, %v259_v58  ;;  %v266_v61 = vmul.f32 %v380_v57, %v265_v59 }
 0x1b4   : > { %v274_v62 = vmul.f32 %v263_v60, %v240_v38 }
 0x1b5   : > { %v267_v63 = vmul.f32 0.5, %v266_v61 }
 0x1b6   : > { %v276_v0 = vmax.f32 %v274_v62, 0.0 }
 0x1b7   : > { %v268_v1 = vsub.f32 1.5, %v267_v63 }
 0x1b8   : > { %278 = vst.msk [vmem:[%s170_s29] sm:$0xff] %vm224_vm0, %v276_v0 }
 0x1b9   : > { %v269_v2 = vmul.f32 %v380_v57, %v268_v1 }
 0x1bb   : > { %v273_v3 = vsel %vm272_vm7, %v380_v57, %v269_v2 }
 0x1bc   : > { %v275_v4 = vmul.f32 %v273_v3, %v241_v43 }
 0x1be   : > { %v277_v5 = vmax.f32 %v275_v4, 0.0 }
 0x1c0   : > { %279 = vst.msk [vmem:[%s170_s29 + $0x8] sm:$0xff] %vm224_vm0, %v277_v5 }
 0x1c1 PF: > { %s13_s12 = sadd.s32 1, %s387_s12  }
 0x1c2   : > { %p10_p4 = scmp.ge.s32.totalorder %s13_s12, 4  }
 0x1c4   :  { %12 = sbr.rel (!%p10_p4) target bundleno = 1 (0x1), region = 62 }

// kernel: base_encoder_forward.9
= control target key start
LH: loop header
LB: loop body
LE: loop exit
PB: predicated region body
PF: predicated region fallthrough
CT: control target
= control target key end

     0   :  { %s549_s12 = smov 0   ;;  %s668_s0 = inlined_call_operand.vmem [shape: f32[2,256,16], index: 0, kind: input, shape index: {}]   ;;  %s669_s1 = inlined_call_operand.vmem [shape: f32[32,256], index: 1, kind: input, shape index: {}]   ;;  %s670_s2 = inlined_call_operand.vmem [shape: f32[32,1], index: 2, kind: input, shape index: {}]   ;;  %s671_s3 = inlined_call_operand.vmem [shape: f32[2,32,16], index: 3, kind: output, shape index: {}]  }
   0x1 LB: > { %s452_s13 = sadd.s32 4294967295, %s525_s12   ;;  %p456_p0 = scmp.ge.s32.totalorder %s525_s12, 1  ;;  %s525_s12 = sphi %s549_s12, %s13_s12  }
   0x2   : > { %p137_p1 = scmp.lt.s32.totalorder %s525_s12, 3 }
   0x4   : > { %p138_p2 = pnand %p456_p0, %p137_p1 }
   0x5   : > { %p161_p3 = scmp.lt.s32.totalorder (!%p138_p2), %s452_s13, 1 }
   0x6   : > { %141 = sbr.rel (%p138_p2) target bundleno = 467 (0x1d3), region = 32 }
   0xb   : > { %s673_s13 = smov (!%p161_p3, %s452_s13), 1  ;;  %v171_v31 = vld [vmem:[%s669_s1] sm:$0xff]  ;;  %v172_v34 = vld [vmem:[%s669_s1 + $0x8] sm:$0xff]  ;;  %v527_v37 = vmov 0   ;;  %v213_v38 = vld [vmem:[%s670_s2 + $0x10] sm:$0xff]  ;;  %vm293_vm0 = vcmask 130048  }
   0xc   : > { %s463_s14 = sshll.u32 %s673_s13, 8  ;;  %v175_v32 = vld [vmem:[%s669_s1 + $0x20] sm:$0xff]  ;;  %v176_v35 = vld [vmem:[%s669_s1 + $0x28] sm:$0xff]  ;;  %507 = vset.pattern.permute.xlu0 %v527_v37  ;;  %508 = vset.pattern.permute.xlu1 %v527_v37  ;;  %v173_v39 = vld [vmem:[%s669_s1 + $0x10] sm:$0xff] }
   0xd   : > { %s563_s17 = scalar_lea.vmem %s668_s0, %s463_s14  ;;  %v211_v36 = vld [vmem:[%s670_s2] sm:$0xff]  ;;  %v177_v40 = vld [vmem:[%s669_s1 + $0x30] sm:$0xff]  ;;  %227 = vperm.xlu1 %508, %v213_v38   ;;  %v174_v41 = vld [vmem:[%s669_s1 + $0x18] sm:$0xff] }
   0xe   : > { %v194_v0 = vld [vmem:[%s563_s17 + $0x78] sm:$0xff]  ;;  %v193_v1 = vld [vmem:[%s563_s17 + $0x70] sm:$0xff]  ;;  %v192_v4 = vld [vmem:[%s563_s17 + $0x68] sm:$0xff]  ;;  %217 = vperm.xlu0 %507, %v211_v36  }
   0xf   : > { %v210_v2 = vld [vmem:[%s563_s17 + $0xf8] sm:$0xff]  ;;  %235 = vmatpush.msra.mxu0 %v194_v0  ;;  %465 = vmatpush.msra.mxu2 %v194_v0  ;;  %v209_v3 = vld [vmem:[%s563_s17 + $0xf0] sm:$0xff]  ;;  %v208_v5 = vld [vmem:[%s563_s17 + $0xe8] sm:$0xff] }
  0x10   : > { %264 = vmatpush.msra.mxu1 %v210_v2  ;;  %481 = vmatpush.msra.mxu3 %v210_v2  ;;  %v191_v6 = vld [vmem:[%s563_s17 + $0x60] sm:$0xff]  ;;  %v190_v8 = vld [vmem:[%s563_s17 + $0x58] sm:$0xff]  ;;  %v189_v10 = vld [vmem:[%s563_s17 + $0x50] sm:$0xff] }
  0x11   : > { %236 = vmatpush.msra.mxu0 %v193_v1  ;;  %466 = vmatpush.msra.mxu2 %v193_v1  ;;  %v207_v7 = vld [vmem:[%s563_s17 + $0xe0] sm:$0xff]  ;;  %v206_v9 = vld [vmem:[%s563_s17 + $0xd8] sm:$0xff]  ;;  %v205_v11 = vld [vmem:[%s563_s17 + $0xd0] sm:$0xff] }
  0x12   : > { %265 = vmatpush.msra.mxu1 %v209_v3  ;;  %482 = vmatpush.msra.mxu3 %v209_v3  ;;  %v188_v12 = vld [vmem:[%s563_s17 + $0x48] sm:$0xff]  ;;  %v187_v14 = vld [vmem:[%s563_s17 + $0x40] sm:$0xff]  ;;  %v186_v16 = vld [vmem:[%s563_s17 + $0x38] sm:$0xff] }
  0x13   : > { %237 = vmatpush.msra.mxu0 %v192_v4  ;;  %467 = vmatpush.msra.mxu2 %v192_v4  ;;  %v204_v13 = vld [vmem:[%s563_s17 + $0xc8] sm:$0xff]  ;;  %v203_v15 = vld [vmem:[%s563_s17 + $0xc0] sm:$0xff]  ;;  %v202_v17 = vld [vmem:[%s563_s17 + $0xb8] sm:$0xff] }
  0x14   : > { %266 = vmatpush.msra.mxu1 %v208_v5  ;;  %483 = vmatpush.msra.mxu3 %v208_v5  ;;  %v185_v18 = vld [vmem:[%s563_s17 + $0x30] sm:$0xff]  ;;  %v184_v20 = vld [vmem:[%s563_s17 + $0x28] sm:$0xff]  ;;  %v183_v22 = vld [vmem:[%s563_s17 + $0x20] sm:$0xff]  ;;  %v528_v5 = vmov 16.0  }
  0x15   : > { %238 = vmatpush.msra.mxu0 %v191_v6  ;;  %468 = vmatpush.msra.mxu2 %v191_v6  ;;  %v201_v19 = vld [vmem:[%s563_s17 + $0xb0] sm:$0xff]  ;;  %v200_v21 = vld [vmem:[%s563_s17 + $0xa8] sm:$0xff]  ;;  %v199_v23 = vld [vmem:[%s563_s17 + $0xa0] sm:$0xff]  ;;  %509 = vrcp.f32 %v528_v5 }
  0x16   : > { %267 = vmatpush.msra.mxu1 %v207_v7  ;;  %484 = vmatpush.msra.mxu3 %v207_v7  ;;  %v182_v24 = vld [vmem:[%s563_s17 + $0x18] sm:$0xff]  ;;  %v181_v26 = vld [vmem:[%s563_s17 + $0x10] sm:$0xff]  ;;  %v180_v28 = vld [vmem:[%s563_s17 + $0x8] sm:$0xff] }
  0x17   : > { %239 = vmatpush.msra.mxu0 %v190_v8  ;;  %469 = vmatpush.msra.mxu2 %v190_v8  ;;  %v198_v25 = vld [vmem:[%s563_s17 + $0x98] sm:$0xff]  ;;  %v197_v27 = vld [vmem:[%s563_s17 + $0x90] sm:$0xff]  ;;  %v196_v29 = vld [vmem:[%s563_s17 + $0x88] sm:$0xff] }
  0x18   : > { %268 = vmatpush.msra.mxu1 %v206_v9  ;;  %485 = vmatpush.msra.mxu3 %v206_v9  ;;  %v179_v30 = vld [vmem:[%s563_s17] sm:$0xff]  ;;  %v178_v42 = vld [vmem:[%s669_s1 + $0x38] sm:$0xff]  ;;  %v212_v43 = vld [vmem:[%s670_s2 + $0x8] sm:$0xff] }
  0x19   : > { %240 = vmatpush.msra.mxu0 %v189_v10  ;;  %470 = vmatpush.msra.mxu2 %v189_v10  ;;  %v195_v33 = vld [vmem:[%s563_s17 + $0x80] sm:$0xff]  ;;  %v214_v44 = vld [vmem:[%s670_s2 + $0x18] sm:$0xff]  ;;  %s464_s17 = sshll.u32 %s673_s13, 5 }
  0x1a   : > { %269 = vmatpush.msra.mxu1 %v205_v11  ;;  %486 = vmatpush.msra.mxu3 %v205_v11  ;;  %s653_s20 = scalar_lea.vmem %s671_s3, %s464_s17 }
  0x1b   : > { %241 = vmatpush.msra.mxu0 %v188_v12  ;;  %471 = vmatpush.msra.mxu2 %v188_v12  ;;  %v510_v6 = vpop.eup %509 }
  0x1c   : > { %270 = vmatpush.msra.mxu1 %v204_v13  ;;  %487 = vmatpush.msra.mxu3 %v204_v13  ;;  %v307_v7 = vmul.f32 16.0, %v510_v6  ;;  %vm311_vm1 = vweird.f32 %v510_v6 }
  0x1d   : > { %242 = vmatpush.msra.mxu0 %v187_v14  ;;  %472 = vmatpush.msra.mxu2 %v187_v14 }
  0x1e   : > { %271 = vmatpush.msra.mxu1 %v203_v15  ;;  %488 = vmatpush.msra.mxu3 %v203_v15  ;;  %v308_v8 = vsub.f32 1.0, %v307_v7 }
  0x1f   : > { %243 = vmatpush.msra.mxu0 %v186_v16  ;;  %473 = vmatpush.msra.mxu2 %v186_v16 }
  0x20   : > { %272 = vmatpush.msra.mxu1 %v202_v17  ;;  %489 = vmatpush.msra.mxu3 %v202_v17  ;;  %v309_v9 = vmul.f32 %v510_v6, %v308_v8 }
  0x21   : > { %244 = vmatpush.msra.mxu0 %v185_v18  ;;  %474 = vmatpush.msra.mxu2 %v185_v18 }
  0x22   : > { %273 = vmatpush.msra.mxu1 %v201_v19  ;;  %490 = vmatpush.msra.mxu3 %v201_v19  ;;  %v310_v10 = vadd.f32 %v510_v6, %v309_v9 }
  0x23   : > { %245 = vmatpush.msra.mxu0 %v184_v20  ;;  %475 = vmatpush.msra.mxu2 %v184_v20 }
  0x24   : > { %274 = vmatpush.msra.mxu1 %v200_v21  ;;  %491 = vmatpush.msra.mxu3 %v200_v21  ;;  %v312_v11 = vsel %vm311_vm1, %v510_v6, %v310_v10 }
  0x25   : > { %246 = vmatpush.msra.mxu0 %v183_v22  ;;  %476 = vmatpush.msra.mxu2 %v183_v22 }
  0x26   : > { %275 = vmatpush.msra.mxu1 %v199_v23  ;;  %492 = vmatpush.msra.mxu3 %v199_v23 }
  0x27   : > { %247 = vmatpush.msra.mxu0 %v182_v24  ;;  %477 = vmatpush.msra.mxu2 %v182_v24 }
  0x28   : > { %276 = vmatpush.msra.mxu1 %v198_v25  ;;  %493 = vmatpush.msra.mxu3 %v198_v25 }
  0x29   : > { %248 = vmatpush.msra.mxu0 %v181_v26  ;;  %478 = vmatpush.msra.mxu2 %v181_v26 }
  0x2a   : > { %277 = vmatpush.msra.mxu1 %v197_v27  ;;  %494 = vmatpush.msra.mxu3 %v197_v27 }
  0x2b   : > { %249 = vmatpush.msra.mxu0 %v180_v28  ;;  %479 = vmatpush.msra.mxu2 %v180_v28 }
  0x2c   : > { %278 = vmatpush.msra.mxu1 %v196_v29  ;;  %495 = vmatpush.msra.mxu3 %v196_v29 }
  0x2d   : > { %250 = vmatpush.msra.mxu0 %v179_v30  ;;  %480 = vmatpush.msra.mxu2 %v179_v30 }
  0x2e   : > { %251 = vmatmul.f32.vlgmr.msra.gmra.mxu0 %v171_v31  ;;  %257 = vmatmul.f32.vlgmr.msra.gmra.mxu2 %v175_v32 }
  0x2f   : > { %279 = vmatpush.msra.mxu1 %v195_v33  ;;  %496 = vmatpush.msra.mxu3 %v195_v33 }
  0x30   : > { %280 = vmatmul.f32.vlgmr.msra.gmra.mxu1 %v172_v34  ;;  %286 = vmatmul.f32.vlgmr.msra.gmra.mxu3 %v176_v35 }
  0x31   : > { %222 = vperm.xlu0 %507, %v212_v43   ;;  %232 = vperm.xlu1 %508, %v214_v44  }
  0x36   : > { %254 = vmatmul.f32.gmra.mxu0 %v173_v39  ;;  %260 = vmatmul.f32.gmra.mxu2 %v177_v40 }
  0x38   : > { %283 = vmatmul.f32.gmra.mxu1 %v174_v41  ;;  %289 = vmatmul.f32.gmra.mxu3 %v178_v42 }
  0x7f   : > { %v228_v50 = vpop.permute.xlu1 %227 }
  0x80   : > { %v218_v45 = vpop.permute.xlu0 %217 }
  0xa3   : > { %v223_v54 = vpop.permute.xlu0 %222  ;;  %v233_v63 = vpop.permute.xlu1 %232 }
  0xab   : > { %v252_v46 = vpop.f32.mrf.mxu0 }
  0xac   : > { %v253_v47 = vadd.f32 %v252_v46, %v218_v45 }
  0xad   : > { %v281_v48 = vpop.f32.mrf.mxu1 }
  0xae   : > { %v282_v49 = vadd.f32 %v281_v48, %v253_v47 }
  0xb0   : > { %v294_v51 = vsel %vm293_vm0, %v282_v49, 0.0 }
  0xb1   : > { %v258_v52 = vpop.f32.mrf.mxu2  ;;  %295 = vadd.xlane.f32.xlu2 %v294_v51 }
  0xb2   : > { %v259_v53 = vadd.f32 %v258_v52, %v228_v50 }
  0xb3   : > { %v255_v55 = vpop.f32.mrf.mxu0  ;;  %v287_v57 = vpop.f32.mrf.mxu3 }
  0xb4   : > { %v256_v56 = vadd.f32 %v255_v55, %v223_v54  ;;  %v288_v58 = vadd.f32 %v287_v57, %v259_v53 }
  0xb5   : > { %v284_v59 = vpop.f32.mrf.mxu1 }
  0xb6   : > { %v285_v60 = vadd.f32 %v284_v59, %v256_v56  ;;  %v300_v61 = vsel %vm293_vm0, %v288_v58, 0.0 }
  0xb7   : > { %301 = vadd.xlane.f32.xlu0 %v300_v61 }
  0xb8   : > { %v297_v62 = vsel %vm293_vm0, %v285_v60, 0.0 }
  0xb9   : > { %v261_v0 = vpop.f32.mrf.mxu2  ;;  %298 = vadd.xlane.f32.xlu2 %v297_v62 }
  0xba   : > { %v262_v1 = vadd.f32 %v261_v0, %v233_v63 }
  0xbb   : > { %v290_v2 = vpop.f32.mrf.mxu3 }
  0xbc   : > { %v291_v3 = vadd.f32 %v290_v2, %v262_v1 }
  0xbe   : > { %v303_v4 = vsel %vm293_vm0, %v291_v3, 0.0 }
  0xbf   : > { %304 = vadd.xlane.f32.xlu1 %v303_v4 }
 0x124   : > { %v296_v12 = vpop.xlane.xlu2 %295 }
 0x125   : > { %v313_v13 = vmul.f32 %v312_v11, %v296_v12 }
 0x127   : > { %v317_v14 = vsub.f32 %v282_v49, %v313_v13 }
 0x129   : > { %v321_v15 = vmul.f32 %v317_v14, %v317_v14 }
 0x12a   : > { %v302_v16 = vpop.xlane.xlu0 %301 }
 0x12b   : > { %v325_v17 = vsel %vm293_vm0, %v321_v15, 0.0  ;;  %v315_v18 = vmul.f32 %v312_v11, %v302_v16 }
 0x12c   : > { %326 = vadd.xlane.f32.xlu2 %v325_v17  ;;  %v299_v19 = vpop.xlane.xlu2 %298 }
 0x12d   : > { %v319_v20 = vsub.f32 %v288_v58, %v315_v18  ;;  %v314_v21 = vmul.f32 %v312_v11, %v299_v19 }
 0x12f   : > { %v323_v22 = vmul.f32 %v319_v20, %v319_v20  ;;  %v638_v23 = vsub.f32 %v285_v60, %v314_v21 }
 0x131   : > { %v331_v24 = vsel %vm293_vm0, %v323_v22, 0.0  ;;  %v322_v27 = vmul.f32 %v638_v23, %v638_v23 }
 0x132   : > { %v305_v25 = vpop.xlane.xlu1 %304 }
 0x133   : > { %v316_v26 = vmul.f32 %v312_v11, %v305_v25  ;;  %v328_v29 = vsel %vm293_vm0, %v322_v27, 0.0 }
 0x134   : > { %332 = vadd.xlane.f32.xlu2 %v331_v24 }
 0x135   : > { %v643_v28 = vsub.f32 %v291_v3, %v316_v26 }
 0x137   : > { %v324_v30 = vmul.f32 %v643_v28, %v643_v28 }
 0x139   : > { %v334_v31 = vsel %vm293_vm0, %v324_v30, 0.0 }
 0x13c   : > { %329 = vadd.xlane.f32.xlu2 %v328_v29 }
 0x144   : > { %335 = vadd.xlane.f32.xlu2 %v334_v31 }
 0x19f   : > { %v327_v32 = vpop.xlane.xlu2 %326 }
 0x1a0   : > { %v337_v33 = vmul.f32 %v327_v32, %v312_v11 }
 0x1a2   : > { %v341_v34 = vadd.f32 1e-05, %v337_v33 }
 0x1a4   : > { %511 = vrsqrt.f32 %v341_v34  ;;  %vm351_vm3 = vweird.f32 %v341_v34 }
 0x1a7   : > { %v333_v35 = vpop.xlane.xlu2 %332 }
 0x1a8   : > { %v339_v36 = vmul.f32 %v333_v35, %v312_v11 }
 0x1aa   : > { %v512_v37 = vpop.eup %511  ;;  %v343_v38 = vadd.f32 1e-05, %v339_v36 }
 0x1ab   : > { %v346_v39 = vmul.f32 %v512_v37, %v341_v34  ;;  %vm352_vm2 = vweird.f32 %v512_v37 }
 0x1ac   : > { %513 = vrsqrt.f32 %v343_v38  ;;  %vm353_vm4 = vmor %vm351_vm3, %vm352_vm2  ;;  %vm371_vm6 = vweird.f32 %v343_v38 }
 0x1ad   : > { %v347_v40 = vmul.f32 %v512_v37, %v346_v39 }
 0x1af   : > { %v348_v41 = vmul.f32 0.5, %v347_v40  ;;  %v330_v42 = vpop.xlane.xlu2 %329 }
 0x1b0   : > { %v338_v43 = vmul.f32 %v330_v42, %v312_v11 }
 0x1b1   : > { %v349_v44 = vsub.f32 1.5, %v348_v41 }
 0x1b2   : > { %v514_v45 = vpop.eup %513  ;;  %v342_v46 = vadd.f32 1e-05, %v338_v43 }
 0x1b3   : > { %v350_v47 = vmul.f32 %v512_v37, %v349_v44  ;;  %v366_v48 = vmul.f32 %v514_v45, %v343_v38  ;;  %vm372_vm5 = vweird.f32 %v514_v45 }
 0x1b4   : > { %515 = vrsqrt.f32 %v342_v46  ;;  %vm373_vm7 = vmor %vm371_vm6, %vm372_vm5  ;;  %vm361_vm9 = vweird.f32 %v342_v46 }
 0x1b5   : > { %v354_v49 = vsel %vm353_vm4, %v512_v37, %v350_v47  ;;  %v367_v50 = vmul.f32 %v514_v45, %v366_v48 }
 0x1b6   : > { %v385_v51 = vmul.f32 %v354_v49, %v317_v14 }
 0x1b7   : > { %v368_v52 = vmul.f32 0.5, %v367_v50  ;;  %v336_v53 = vpop.xlane.xlu2 %335 }
 0x1b8   : > { %v389_v54 = vmax.f32 %v385_v51, 0.0  ;;  %v340_v55 = vmul.f32 %v336_v53, %v312_v11 }
 0x1b9   : > { %v369_v56 = vsub.f32 1.5, %v368_v52 }
 0x1ba   : > { %v516_v57 = vpop.eup %515  ;;  %393 = vst.msk [vmem:[%s653_s20] sm:$0xff] %vm293_vm0, %v389_v54  ;;  %v344_v58 = vadd.f32 1e-05, %v340_v55 }
 0x1bb   : > { %v370_v59 = vmul.f32 %v514_v45, %v369_v56  ;;  %v356_v60 = vmul.f32 %v516_v57, %v342_v46  ;;  %vm362_vm8 = vweird.f32 %v516_v57 }
 0x1bc   : > { %517 = vrsqrt.f32 %v344_v58  ;;  %vm363_vm10 = vmor %vm361_vm9, %vm362_vm8  ;;  %vm381_vm12 = vweird.f32 %v344_v58 }
 0x1bd   : > { %v374_v61 = vsel %vm373_vm7, %v514_v45, %v370_v59  ;;  %v357_v62 = vmul.f32 %v516_v57, %v356_v60 }
 0x1be   : > { %v387_v63 = vmul.f32 %v374_v61, %v319_v20 }
 0x1bf   : > { %v358_v0 = vmul.f32 0.5, %v357_v62 }
 0x1c0   : > { %v391_v1 = vmax.f32 %v387_v63, 0.0 }
 0x1c1   : > { %v359_v2 = vsub.f32 1.5, %v358_v0 }
 0x1c2   : > { %v518_v3 = vpop.eup %517  ;;  %395 = vst.msk [vmem:[%s653_s20 + $0x10] sm:$0xff] %vm293_vm0, %v391_v1 }
 0x1c3   : > { %v360_v4 = vmul.f32 %v516_v57, %v359_v2  ;;  %v376_v5 = vmul.f32 %v518_v3, %v344_v58  ;;  %vm382_vm11 = vweird.f32 %v518_v3 }
 0x1c4   : > { %vm383_vm13 = vmor %vm381_vm12, %vm382_vm11 }
 0x1c5   : > { %v364_v6 = vsel %vm363_vm10, %v516_v57, %v360_v4  ;;  %v377_v7 = vmul.f32 %v518_v3, %v376_v5 }
 0x1c6   : > { %v386_v8 = vmul.f32 %v364_v6, %v638_v23 }
 0x1c7   : > { %v378_v9 = vmul.f32 0.5, %v377_v7 }
 0x1c8   : > { %v390_v10 = vmax.f32 %v386_v8, 0.0 }
 0x1c9   : > { %v379_v11 = vsub.f32 1.5, %v378_v9 }
 0x1ca   : > { %394 = vst.msk [vmem:[%s653_s20 + $0x8] sm:$0xff] %vm293_vm0, %v390_v10 }
 0x1cb   : > { %v380_v12 = vmul.f32 %v518_v3, %v379_v11 }
 0x1cd   : > { %v384_v13 = vsel %vm383_vm13, %v518_v3, %v380_v12 }
 0x1ce   : > { %v388_v14 = vmul.f32 %v384_v13, %v643_v28 }
 0x1d0   : > { %v392_v15 = vmax.f32 %v388_v14, 0.0 }
 0x1d2   : > { %396 = vst.msk [vmem:[%s653_s20 + $0x18] sm:$0xff] %vm293_vm0, %v392_v15 }
 0x1d3 PF: > { %s13_s12 = sadd.s32 1, %s525_s12  }
 0x1d4   : > { %p10_p4 = scmp.ge.s32.totalorder %s13_s12, 4  }
 0x1d6   :  { %12 = sbr.rel (!%p10_p4) target bundleno = 1 (0x1), region = 62 }

// kernel: base_encoder_forward.10
= control target key start
LH: loop header
LB: loop body
LE: loop exit
PB: predicated region body
PF: predicated region fallthrough
CT: control target
= control target key end

     0   :  { %s581_s12 = smov 0   ;;  %s728_s0 = inlined_call_operand.vmem [shape: f32[2,384,16], index: 0, kind: input, shape index: {}]   ;;  %s729_s1 = inlined_call_operand.vmem [shape: f32[32,384], index: 1, kind: input, shape index: {}]   ;;  %s730_s2 = inlined_call_operand.vmem [shape: f32[32,1], index: 2, kind: input, shape index: {}]   ;;  %s731_s3 = inlined_call_operand.vmem [shape: f32[2,32,16], index: 3, kind: output, shape index: {}]  }
   0x1 LB: > { %s501_s13 = sadd.s32 4294967295, %s557_s12   ;;  %p505_p0 = scmp.ge.s32.totalorder %s557_s12, 1  ;;  %s557_s12 = sphi %s581_s12, %s13_s12  }
   0x2   : > { %p137_p1 = scmp.lt.s32.totalorder %s557_s12, 3 }
   0x4   : > { %p138_p2 = pnand %p505_p0, %p137_p1 }
   0x5   : > { %p161_p3 = scmp.lt.s32.totalorder (!%p138_p2), %s501_s13, 1 }
   0x6   : > { %141 = sbr.rel (%p138_p2) target bundleno = 474 (0x1da), region = 32 }
   0xb   : > { %s733_s13 = smov (!%p161_p3, %s501_s13), 1  ;;  %v174_v48 = vld [vmem:[%s729_s1 + $0x18] sm:$0xff]  ;;  %v172_v49 = vld [vmem:[%s729_s1 + $0x8] sm:$0xff]  ;;  %v173_v50 = vld [vmem:[%s729_s1 + $0x10] sm:$0xff]  ;;  %v559_v53 = vmov 0   ;;  %vm342_vm0 = vcmask 130048  }
   0xc   : > { %s528_s14 = smul.u32 384, %s733_s13  ;;  %v171_v51 = vld [vmem:[%s729_s1] sm:$0xff]  ;;  %539 = vset.pattern.permute.xlu0 %v559_v53  ;;  %v233_v54 = vld [vmem:[%s730_s2 + $0x10] sm:$0xff]  ;;  %540 = vset.pattern.permute.xlu1 %v559_v53  ;;  %v176_v57 = vld [vmem:[%s729_s1 + $0x28] sm:$0xff]  ;;  %s511_s25 = sshll.u32 %s733_s13, 5 }
   0xd   : > { %v231_v52 = vld [vmem:[%s730_s2] sm:$0xff]  ;;  %v177_v55 = vld [vmem:[%s729_s1 + $0x30] sm:$0xff]  ;;  %247 = vperm.xlu1 %540, %v233_v54   ;;  %v232_v58 = vld [vmem:[%s730_s2 + $0x8] sm:$0xff]  ;;  %s713_s28 = scalar_lea.vmem %s731_s3, %s511_s25 }
   0xe   : > { %s595_s17 = scalar_lea.vmem %s728_s0, %s528_s14  ;;  %237 = vperm.xlu0 %539, %v231_v52   ;;  %v175_v56 = vld [vmem:[%s729_s1 + $0x20] sm:$0xff]  ;;  %v234_v59 = vld [vmem:[%s730_s2 + $0x18] sm:$0xff]  ;;  %v180_v60 = vld [vmem:[%s729_s1 + $0x48] sm:$0xff] }
   0xf   : > { %v198_v0 = vld [vmem:[%s595_s17 + $0x78] sm:$0xff]  ;;  %v197_v3 = vld [vmem:[%s595_s17 + $0x70] sm:$0xff]  ;;  %v196_v6 = vld [vmem:[%s595_s17 + $0x68] sm:$0xff] }
  0x10   : > { %v214_v1 = vld [vmem:[%s595_s17 + $0xf8] sm:$0xff]  ;;  %512 = vmatpush.msra.mxu3 %v198_v0  ;;  %v213_v4 = vld [vmem:[%s595_s17 + $0xf0] sm:$0xff]  ;;  %255 = vmatpush.msra.mxu0 %v198_v0  ;;  %v212_v7 = vld [vmem:[%s595_s17 + $0xe8] sm:$0xff] }
  0x11   : > { %v230_v2 = vld [vmem:[%s595_s17 + $0x178] sm:$0xff]  ;;  %284 = vmatpush.msra.mxu1 %v214_v1  ;;  %v229_v5 = vld [vmem:[%s595_s17 + $0x170] sm:$0xff]  ;;  %v228_v8 = vld [vmem:[%s595_s17 + $0x168] sm:$0xff] }
  0x12   : > { %313 = vmatpush.msra.mxu2 %v230_v2  ;;  %513 = vmatpush.msra.mxu3 %v197_v3  ;;  %v195_v9 = vld [vmem:[%s595_s17 + $0x60] sm:$0xff]  ;;  %v194_v12 = vld [vmem:[%s595_s17 + $0x58] sm:$0xff]  ;;  %v193_v15 = vld [vmem:[%s595_s17 + $0x50] sm:$0xff] }
  0x13   : > { %285 = vmatpush.msra.mxu1 %v213_v4  ;;  %256 = vmatpush.msra.mxu0 %v197_v3  ;;  %v211_v10 = vld [vmem:[%s595_s17 + $0xe0] sm:$0xff]  ;;  %v210_v13 = vld [vmem:[%s595_s17 + $0xd8] sm:$0xff]  ;;  %v209_v16 = vld [vmem:[%s595_s17 + $0xd0] sm:$0xff] }
  0x14   : > { %314 = vmatpush.msra.mxu2 %v229_v5  ;;  %514 = vmatpush.msra.mxu3 %v196_v6  ;;  %v227_v11 = vld [vmem:[%s595_s17 + $0x160] sm:$0xff]  ;;  %v226_v14 = vld [vmem:[%s595_s17 + $0x158] sm:$0xff]  ;;  %v225_v17 = vld [vmem:[%s595_s17 + $0x150] sm:$0xff] }
  0x15   : > { %286 = vmatpush.msra.mxu1 %v212_v7  ;;  %257 = vmatpush.msra.mxu0 %v196_v6  ;;  %v192_v18 = vld [vmem:[%s595_s17 + $0x48] sm:$0xff]  ;;  %v191_v21 = vld [vmem:[%s595_s17 + $0x40] sm:$0xff]  ;;  %v190_v24 = vld [vmem:[%s595_s17 + $0x38] sm:$0xff] }
  0x16   : > { %315 = vmatpush.msra.mxu2 %v228_v8  ;;  %515 = vmatpush.msra.mxu3 %v195_v9  ;;  %v208_v19 = vld [vmem:[%s595_s17 + $0xc8] sm:$0xff]  ;;  %v207_v22 = vld [vmem:[%s595_s17 + $0xc0] sm:$0xff]  ;;  %v206_v25 = vld [vmem:[%s595_s17 + $0xb8] sm:$0xff] }
  0x17   : > { %287 = vmatpush.msra.mxu1 %v211_v10  ;;  %258 = vmatpush.msra.mxu0 %v195_v9  ;;  %v224_v20 = vld [vmem:[%s595_s17 + $0x148] sm:$0xff]  ;;  %v223_v23 = vld [vmem:[%s595_s17 + $0x140] sm:$0xff]  ;;  %v222_v26 = vld [vmem:[%s595_s17 + $0x138] sm:$0xff] }
  0x18   : > { %316 = vmatpush.msra.mxu2 %v227_v11  ;;  %516 = vmatpush.msra.mxu3 %v194_v12  ;;  %v189_v27 = vld [vmem:[%s595_s17 + $0x30] sm:$0xff]  ;;  %v188_v30 = vld [vmem:[%s595_s17 + $0x28] sm:$0xff]  ;;  %v187_v33 = vld [vmem:[%s595_s17 + $0x20] sm:$0xff] }
  0x19   : > { %288 = vmatpush.msra.mxu1 %v210_v13  ;;  %259 = vmatpush.msra.mxu0 %v194_v12  ;;  %v205_v28 = vld [vmem:[%s595_s17 + $0xb0] sm:$0xff]  ;;  %v204_v31 = vld [vmem:[%s595_s17 + $0xa8] sm:$0xff]  ;;  %v203_v34 = vld [vmem:[%s595_s17 + $0xa0] sm:$0xff] }
  0x1a   : > { %317 = vmatpush.msra.mxu2 %v226_v14  ;;  %517 = vmatpush.msra.mxu3 %v193_v15  ;;  %v221_v29 = vld [vmem:[%s595_s17 + $0x130] sm:$0xff]  ;;  %v220_v32 = vld [vmem:[%s595_s17 + $0x128] sm:$0xff]  ;;  %v219_v35 = vld [vmem:[%s595_s17 + $0x120] sm:$0xff] }
  0x1b   : > { %289 = vmatpush.msra.mxu1 %v209_v16  ;;  %260 = vmatpush.msra.mxu0 %v193_v15  ;;  %v186_v36 = vld [vmem:[%s595_s17 + $0x18] sm:$0xff]  ;;  %v185_v39 = vld [vmem:[%s595_s17 + $0x10] sm:$0xff]  ;;  %v184_v42 = vld [vmem:[%s595_s17 + $0x8] sm:$0xff] }
  0x1c   : > { %318 = vmatpush.msra.mxu2 %v225_v17  ;;  %518 = vmatpush.msra.mxu3 %v192_v18  ;;  %v202_v37 = vld [vmem:[%s595_s17 + $0x98] sm:$0xff]  ;;  %v201_v40 = vld [vmem:[%s595_s17 + $0x90] sm:$0xff]  ;;  %v200_v43 = vld [vmem:[%s595_s17 + $0x88] sm:$0xff] }
  0x1d   : > { %290 = vmatpush.msra.mxu1 %v208_v19  ;;  %261 = vmatpush.msra.mxu0 %v192_v18  ;;  %v218_v38 = vld [vmem:[%s595_s17 + $0x118] sm:$0xff]  ;;  %v217_v41 = vld [vmem:[%s595_s17 + $0x110] sm:$0xff]  ;;  %v216_v44 = vld [vmem:[%s595_s17 + $0x108] sm:$0xff] }
  0x1e   : > { %319 = vmatpush.msra.mxu2 %v224_v20  ;;  %519 = vmatpush.msra.mxu3 %v191_v21  ;;  %v183_v45 = vld [vmem:[%s595_s17] sm:$0xff]  ;;  %v178_v61 = vld [vmem:[%s729_s1 + $0x38] sm:$0xff]  ;;  %v181_v63 = vld [vmem:[%s729_s1 + $0x50] sm:$0xff] }
  0x1f   : > { %291 = vmatpush.msra.mxu1 %v207_v22  ;;  %262 = vmatpush.msra.mxu0 %v191_v21  ;;  %v199_v46 = vld [vmem:[%s595_s17 + $0x80] sm:$0xff]  ;;  %v182_v0 = vld [vmem:[%s729_s1 + $0x58] sm:$0xff] }
  0x20   : > { %320 = vmatpush.msra.mxu2 %v223_v23  ;;  %520 = vmatpush.msra.mxu3 %v190_v24  ;;  %v215_v47 = vld [vmem:[%s595_s17 + $0x100] sm:$0xff] }
  0x21   : > { %292 = vmatpush.msra.mxu1 %v206_v25  ;;  %263 = vmatpush.msra.mxu0 %v190_v24  ;;  %v179_v62 = vld [vmem:[%s729_s1 + $0x40] sm:$0xff] }
  0x22   : > { %321 = vmatpush.msra.mxu2 %v222_v26  ;;  %521 = vmatpush.msra.mxu3 %v189_v27 }
  0x23   : > { %293 = vmatpush.msra.mxu1 %v205_v28  ;;  %264 = vmatpush.msra.mxu0 %v189_v27 }
  0x24   : > { %322 = vmatpush.msra.mxu2 %v221_v29  ;;  %522 = vmatpush.msra.mxu3 %v188_v30 }
  0x25   : > { %294 = vmatpush.msra.mxu1 %v204_v31  ;;  %265 = vmatpush.msra.mxu0 %v188_v30 }
  0x26   : > { %323 = vmatpush.msra.mxu2 %v220_v32  ;;  %523 = vmatpush.msra.mxu3 %v187_v33 }
  0x27   : > { %295 = vmatpush.msra.mxu1 %v203_v34  ;;  %266 = vmatpush.msra.mxu0 %v187_v33  ;;  %v560_v33 = vmov 16.0  }
  0x28   : > { %324 = vmatpush.msra.mxu2 %v219_v35  ;;  %524 = vmatpush.msra.mxu3 %v186_v36  ;;  %541 = vrcp.f32 %v560_v33 }
  0x29   : > { %296 = vmatpush.msra.mxu1 %v202_v37  ;;  %267 = vmatpush.msra.mxu0 %v186_v36 }
  0x2a   : > { %325 = vmatpush.msra.mxu2 %v218_v38  ;;  %525 = vmatpush.msra.mxu3 %v185_v39 }
  0x2b   : > { %297 = vmatpush.msra.mxu1 %v201_v40  ;;  %268 = vmatpush.msra.mxu0 %v185_v39 }
  0x2c   : > { %326 = vmatpush.msra.mxu2 %v217_v41  ;;  %526 = vmatpush.msra.mxu3 %v184_v42 }
  0x2d   : > { %298 = vmatpush.msra.mxu1 %v200_v43  ;;  %269 = vmatpush.msra.mxu0 %v184_v42 }
  0x2e   : > { %327 = vmatpush.msra.mxu2 %v216_v44  ;;  %527 = vmatpush.msra.mxu3 %v183_v45  ;;  %v542_v34 = vpop.eup %541 }
  0x2f   : > { %299 = vmatpush.msra.mxu1 %v199_v46  ;;  %274 = vmatmul.f32.vlgmr.msra.gmra.mxu3 %v174_v48  ;;  %v356_v35 = vmul.f32 16.0, %v542_v34  ;;  %vm360_vm1 = vweird.f32 %v542_v34 }
  0x30   : > { %328 = vmatpush.msra.mxu2 %v215_v47  ;;  %300 = vmatmul.f32.vlgmr.msra.gmra.mxu1 %v172_v49 }
  0x31   : > { %329 = vmatmul.f32.vlgmr.msra.gmra.mxu2 %v173_v50  ;;  %270 = vmatpush.msra.mxu0 %v183_v45  ;;  %v357_v36 = vsub.f32 1.0, %v356_v35 }
  0x32   : > { %271 = vmatmul.f32.vlgmr.msra.gmra.mxu0 %v171_v51  ;;  %242 = vperm.xlu0 %539, %v232_v58  }
  0x33   : > { %252 = vperm.xlu1 %540, %v234_v59   ;;  %v358_v37 = vmul.f32 %v542_v34, %v357_v36 }
  0x35   : > { %v359_v38 = vadd.f32 %v542_v34, %v358_v37 }
  0x37   : > { %277 = vmatmul.f32.gmra.mxu3 %v177_v55  ;;  %v361_v39 = vsel %vm360_vm1, %v542_v34, %v359_v38 }
  0x38   : > { %303 = vmatmul.f32.gmra.mxu1 %v175_v56 }
  0x39   : > { %332 = vmatmul.f32.gmra.mxu2 %v176_v57 }
  0x3f   : > { %280 = vmatmul.f32.gmra.mxu3 %v180_v60 }
  0x40   : > { %306 = vmatmul.f32.gmra.mxu1 %v178_v61 }
  0x41   : > { %335 = vmatmul.f32.gmra.mxu2 %v179_v62 }
  0x48   : > { %309 = vmatmul.f32.gmra.mxu1 %v181_v63 }
  0x49   : > { %338 = vmatmul.f32.gmra.mxu2 %v182_v0 }
  0x7f   : > { %v248_v15 = vpop.permute.xlu1 %247 }
  0x80   : > { %v238_v1 = vpop.permute.xlu0 %237 }
  0xa4   : > { %v243_v9 = vpop.permute.xlu0 %242 }
  0xa5   : > { %v253_v25 = vpop.permute.xlu1 %252 }
  0xad   : > { %v301_v2 = vpop.f32.mrf.mxu1 }
  0xaf   : > { %v272_v3 = vpop.f32.mrf.mxu0 }
  0xb0   : > { %v273_v4 = vadd.f32 %v272_v3, %v238_v1 }
  0xb2   : > { %v275_v5 = vpop.f32.mrf.mxu3  ;;  %v302_v6 = vadd.f32 %v301_v2, %v273_v4 }
  0xb3   : > { %v276_v11 = vadd.f32 %v275_v5, %v243_v9 }
  0xb4   : > { %v330_v7 = vpop.f32.mrf.mxu2 }
  0xb5   : > { %v331_v8 = vadd.f32 %v330_v7, %v302_v6  ;;  %v304_v10 = vpop.f32.mrf.mxu1 }
  0xb6   : > { %v305_v13 = vadd.f32 %v304_v10, %v276_v11 }
  0xb7   : > { %v343_v12 = vsel %vm342_vm0, %v331_v8, 0.0 }
  0xb8   : > { %344 = vadd.xlane.f32.xlu2 %v343_v12 }
  0xba   : > { %v278_v14 = vpop.f32.mrf.mxu3 }
  0xbb   : > { %v279_v17 = vadd.f32 %v278_v14, %v248_v15 }
  0xbc   : > { %v333_v16 = vpop.f32.mrf.mxu2 }
  0xbd   : > { %v334_v18 = vadd.f32 %v333_v16, %v305_v13  ;;  %v307_v19 = vpop.f32.mrf.mxu1 }
  0xbe   : > { %v308_v21 = vadd.f32 %v307_v19, %v279_v17 }
  0xbf   : > { %v346_v20 = vsel %vm342_vm0, %v334_v18, 0.0 }
  0xc0   : > { %347 = vadd.xlane.f32.xlu2 %v346_v20 }
  0xc2   : > { %v281_v22 = vpop.f32.mrf.mxu3 }
  0xc3   : > { %v282_v26 = vadd.f32 %v281_v22, %v253_v25 }
  0xc4   : > { %v336_v23 = vpop.f32.mrf.mxu2 }
  0xc5   : > { %v337_v24 = vadd.f32 %v336_v23, %v308_v21  ;;  %v310_v28 = vpop.f32.mrf.mxu1 }
  0xc6   : > { %v311_v29 = vadd.f32 %v310_v28, %v282_v26 }
  0xc7   : > { %v349_v27 = vsel %vm342_vm0, %v337_v24, 0.0 }
  0xc8   : > { %350 = vadd.xlane.f32.xlu0 %v349_v27 }
  0xcc   : > { %v339_v30 = vpop.f32.mrf.mxu2 }
  0xcd   : > { %v340_v31 = vadd.f32 %v339_v30, %v311_v29 }
  0xcf   : > { %v352_v32 = vsel %vm342_vm0, %v340_v31, 0.0 }
  0xd0   : > { %353 = vadd.xlane.f32.xlu1 %v352_v32 }
 0x12b   : > { %v345_v40 = vpop.xlane.xlu2 %344 }
 0x12c   : > { %v362_v41 = vmul.f32 %v361_v39, %v345_v40 }
 0x12e   : > { %v366_v42 = vsub.f32 %v331_v8, %v362_v41 }
 0x130   : > { %v370_v43 = vmul.f32 %v366_v42, %v366_v42 }
 0x132   : > { %v374_v44 = vsel %vm342_vm0, %v370_v43, 0.0 }
 0x133   : > { %375 = vadd.xlane.f32.xlu2 %v374_v44  ;;  %v348_v45 = vpop.xlane.xlu2 %347 }
 0x134   : > { %v363_v46 = vmul.f32 %v361_v39, %v348_v45 }
 0x136   : > { %v367_v47 = vsub.f32 %v334_v18, %v363_v46 }
 0x138   : > { %v371_v48 = vmul.f32 %v367_v47, %v367_v47 }
 0x13a   : > { %v377_v49 = vsel %vm342_vm0, %v371_v48, 0.0 }
 0x13b   : > { %v351_v50 = vpop.xlane.xlu0 %350  ;;  %378 = vadd.xlane.f32.xlu2 %v377_v49 }
 0x13c   : > { %v364_v51 = vmul.f32 %v361_v39, %v351_v50 }
 0x13e   : > { %v699_v52 = vsub.f32 %v337_v24, %v364_v51 }
 0x140   : > { %v372_v53 = vmul.f32 %v699_v52, %v699_v52 }
 0x142   : > { %v380_v54 = vsel %vm342_vm0, %v372_v53, 0.0 }
 0x143   : > { %v354_v55 = vpop.xlane.xlu1 %353  ;;  %381 = vadd.xlane.f32.xlu2 %v380_v54 }
 0x144   : > { %v365_v56 = vmul.f32 %v361_v39, %v354_v55 }
 0x146   : > { %v704_v57 = vsub.f32 %v340_v31, %v365_v56 }
 0x148   : > { %v373_v58 = vmul.f32 %v704_v57, %v704_v57 }
 0x14a   : > { %v383_v59 = vsel %vm342_vm0, %v373_v58, 0.0 }
 0x14b   : > { %384 = vadd.xlane.f32.xlu2 %v383_v59 }
 0x1a6   : > { %v376_v60 = vpop.xlane.xlu2 %375 }
 0x1a7   : > { %v386_v61 = vmul.f32 %v376_v60, %v361_v39 }
 0x1a9   : > { %v390_v62 = vadd.f32 1e-05, %v386_v61 }
 0x1ab   : > { %543 = vrsqrt.f32 %v390_v62  ;;  %vm400_vm3 = vweird.f32 %v390_v62 }
 0x1ae   : > { %v379_v63 = vpop.xlane.xlu2 %378 }
 0x1af   : > { %v387_v0 = vmul.f32 %v379_v63, %v361_v39 }
 0x1b1   : > { %v544_v1 = vpop.eup %543  ;;  %v391_v2 = vadd.f32 1e-05, %v387_v0 }
 0x1b2   : > { %v395_v3 = vmul.f32 %v544_v1, %v390_v62  ;;  %vm401_vm2 = vweird.f32 %v544_v1 }
 0x1b3   : > { %545 = vrsqrt.f32 %v391_v2  ;;  %vm402_vm4 = vmor %vm400_vm3, %vm401_vm2  ;;  %vm410_vm6 = vweird.f32 %v391_v2 }
 0x1b4   : > { %v396_v4 = vmul.f32 %v544_v1, %v395_v3 }
 0x1b6   : > { %v397_v5 = vmul.f32 0.5, %v396_v4  ;;  %v382_v6 = vpop.xlane.xlu2 %381 }
 0x1b7   : > { %v388_v7 = vmul.f32 %v382_v6, %v361_v39 }
 0x1b8   : > { %v398_v8 = vsub.f32 1.5, %v397_v5 }
 0x1b9   : > { %v546_v9 = vpop.eup %545  ;;  %v392_v10 = vadd.f32 1e-05, %v388_v7 }
 0x1ba   : > { %v399_v11 = vmul.f32 %v544_v1, %v398_v8  ;;  %v405_v12 = vmul.f32 %v546_v9, %v391_v2  ;;  %vm411_vm5 = vweird.f32 %v546_v9 }
 0x1bb   : > { %547 = vrsqrt.f32 %v392_v10  ;;  %vm412_vm7 = vmor %vm410_vm6, %vm411_vm5  ;;  %vm420_vm9 = vweird.f32 %v392_v10 }
 0x1bc   : > { %v403_v13 = vsel %vm402_vm4, %v544_v1, %v399_v11  ;;  %v406_v14 = vmul.f32 %v546_v9, %v405_v12 }
 0x1bd   : > { %v434_v15 = vmul.f32 %v403_v13, %v366_v42 }
 0x1be   : > { %v407_v16 = vmul.f32 0.5, %v406_v14  ;;  %v385_v17 = vpop.xlane.xlu2 %384 }
 0x1bf   : > { %v438_v18 = vmax.f32 %v434_v15, 0.0  ;;  %v389_v19 = vmul.f32 %v385_v17, %v361_v39 }
 0x1c0   : > { %v408_v20 = vsub.f32 1.5, %v407_v16 }
 0x1c1   : > { %v548_v21 = vpop.eup %547  ;;  %442 = vst.msk [vmem:[%s713_s28] sm:$0xff] %vm342_vm0, %v438_v18  ;;  %v393_v22 = vadd.f32 1e-05, %v389_v19 }
 0x1c2   : > { %v409_v23 = vmul.f32 %v546_v9, %v408_v20  ;;  %v415_v24 = vmul.f32 %v548_v21, %v392_v10  ;;  %vm421_vm8 = vweird.f32 %v548_v21 }
 0x1c3   : > { %549 = vrsqrt.f32 %v393_v22  ;;  %vm422_vm10 = vmor %vm420_vm9, %vm421_vm8  ;;  %vm430_vm12 = vweird.f32 %v393_v22 }
 0x1c4   : > { %v413_v25 = vsel %vm412_vm7, %v546_v9, %v409_v23  ;;  %v416_v26 = vmul.f32 %v548_v21, %v415_v24 }
 0x1c5   : > { %v435_v27 = vmul.f32 %v413_v25, %v367_v47 }
 0x1c6   : > { %v417_v28 = vmul.f32 0.5, %v416_v26 }
 0x1c7   : > { %v439_v29 = vmax.f32 %v435_v27, 0.0 }
 0x1c8   : > { %v418_v30 = vsub.f32 1.5, %v417_v28 }
 0x1c9   : > { %v550_v31 = vpop.eup %549  ;;  %443 = vst.msk [vmem:[%s713_s28 + $0x8] sm:$0xff] %vm342_vm0, %v439_v29 }
 0x1ca   : > { %v419_v32 = vmul.f32 %v548_v21, %v418_v30  ;;  %v425_v33 = vmul.f32 %v550_v31, %v393_v22  ;;  %vm431_vm11 = vweird.f32 %v550_v31 }
 0x1cb   : > { %vm432_vm13 = vmor %vm430_vm12, %vm431_vm11 }
 0x1cc   : > { %v423_v34 = vsel %vm422_vm10, %v548_v21, %v419_v32  ;;  %v426_v35 = vmul.f32 %v550_v31, %v425_v33 }
 0x1cd   : > { %v436_v36 = vmul.f32 %v423_v34, %v699_v52 }
 0x1ce   : > { %v427_v37 = vmul.f32 0.5, %v426_v35 }
 0x1cf   : > { %v440_v38 = vmax.f32 %v436_v36, 0.0 }
 0x1d0   : > { %v428_v39 = vsub.f32 1.5, %v427_v37 }
 0x1d1   : > { %444 = vst.msk [vmem:[%s713_s28 + $0x10] sm:$0xff] %vm342_vm0, %v440_v38 }
 0x1d2   : > { %v429_v40 = vmul.f32 %v550_v31, %v428_v39 }
 0x1d4   : > { %v433_v41 = vsel %vm432_vm13, %v550_v31, %v429_v40 }
 0x1d5   : > { %v437_v42 = vmul.f32 %v433_v41, %v704_v57 }
 0x1d7   : > { %v441_v43 = vmax.f32 %v437_v42, 0.0 }
 0x1d9   : > { %445 = vst.msk [vmem:[%s713_s28 + $0x18] sm:$0xff] %vm342_vm0, %v441_v43 }
 0x1da PF: > { %s13_s12 = sadd.s32 1, %s557_s12  }
 0x1db   : > { %p10_p4 = scmp.ge.s32.totalorder %s13_s12, 4  }
 0x1dd   :  { %12 = sbr.rel (!%p10_p4) target bundleno = 1 (0x1), region = 62 }

// kernel: base_encoder_forward.11
= control target key start
LH: loop header
LB: loop body
LE: loop exit
PB: predicated region body
PF: predicated region fallthrough
CT: control target
= control target key end

     0   :  { %s652_s15 = smov 0   ;;  %s813_s0 = inlined_call_operand.vmem [shape: f32[2,384,16], index: 0, kind: input, shape index: {}]   ;;  %s814_s1 = inlined_call_operand.vmem [shape: f32[32,384], index: 1, kind: input, shape index: {}]   ;;  %s815_s2 = inlined_call_operand.vmem [shape: f32[32,1], index: 2, kind: input, shape index: {}]   ;;  %s816_s3 = inlined_call_operand.vmem [shape: f32[2,32,16], index: 3, kind: input, shape index: {}]   ;;  %s817_s4 = inlined_call_operand.vmem [shape: f32[2,32,16], index: 4, kind: output, shape index: {}]  }
   0x1 LB: > { %s564_s16 = sadd.s32 4294967295, %s623_s15   ;;  %p568_p0 = scmp.ge.s32.totalorder %s623_s15, 1  ;;  %s623_s15 = sphi %s652_s15, %s14_s15  }
   0x2   : > { %p172_p1 = scmp.lt.s32.totalorder %s623_s15, 3 }
   0x4   : > { %p173_p2 = pnand %p568_p0, %p172_p1 }
   0x5   : > { %p203_p3 = scmp.lt.s32.totalorder (!%p173_p2), %s564_s16, 1 }
   0x6   : > { %176 = sbr.rel (%p173_p2) target bundleno = 474 (0x1da), region = 36 }
   0xb   : > { %s819_s16 = smov (!%p203_p3, %s564_s16), 1  ;;  %v221_v48 = vld [vmem:[%s814_s1 + $0x18] sm:$0xff]  ;;  %v219_v49 = vld [vmem:[%s814_s1 + $0x8] sm:$0xff]  ;;  %v220_v50 = vld [vmem:[%s814_s1 + $0x10] sm:$0xff]  ;;  %v625_v53 = vmov 0   ;;  %vm389_vm0 = vcmask 130048  }
   0xc   : > { %s594_s17 = smul.u32 384, %s819_s16  ;;  %v218_v51 = vld [vmem:[%s814_s1] sm:$0xff]  ;;  %605 = vset.pattern.permute.xlu0 %v625_v53  ;;  %v280_v54 = vld [vmem:[%s815_s2 + $0x10] sm:$0xff]  ;;  %606 = vset.pattern.permute.xlu1 %v625_v53  ;;  %v223_v57 = vld [vmem:[%s814_s1 + $0x28] sm:$0xff]  ;;  %s576_s29 = sshll.u32 %s819_s16, 5 }
   0xd   : > { %v278_v52 = vld [vmem:[%s815_s2] sm:$0xff]  ;;  %v224_v55 = vld [vmem:[%s814_s1 + $0x30] sm:$0xff]  ;;  %294 = vperm.xlu1 %606, %v280_v54   ;;  %v279_v58 = vld [vmem:[%s815_s2 + $0x8] sm:$0xff]  ;;  %s788_s6 = scalar_lea.vmem %s816_s3, %s576_s29  ;;  %s794_s8 = scalar_lea.vmem %s817_s4, %s576_s29 }
   0xe   : > { %s666_s20 = scalar_lea.vmem %s813_s0, %s594_s17  ;;  %284 = vperm.xlu0 %605, %v278_v52   ;;  %v222_v56 = vld [vmem:[%s814_s1 + $0x20] sm:$0xff]  ;;  %v281_v59 = vld [vmem:[%s815_s2 + $0x18] sm:$0xff]  ;;  %v227_v60 = vld [vmem:[%s814_s1 + $0x48] sm:$0xff] }
   0xf   : > { %v245_v0 = vld [vmem:[%s666_s20 + $0x78] sm:$0xff]  ;;  %v244_v3 = vld [vmem:[%s666_s20 + $0x70] sm:$0xff]  ;;  %v243_v6 = vld [vmem:[%s666_s20 + $0x68] sm:$0xff] }
  0x10   : > { %v261_v1 = vld [vmem:[%s666_s20 + $0xf8] sm:$0xff]  ;;  %578 = vmatpush.msra.mxu3 %v245_v0  ;;  %v260_v4 = vld [vmem:[%s666_s20 + $0xf0] sm:$0xff]  ;;  %302 = vmatpush.msra.mxu0 %v245_v0  ;;  %v259_v7 = vld [vmem:[%s666_s20 + $0xe8] sm:$0xff] }
  0x11   : > { %v277_v2 = vld [vmem:[%s666_s20 + $0x178] sm:$0xff]  ;;  %331 = vmatpush.msra.mxu1 %v261_v1  ;;  %v276_v5 = vld [vmem:[%s666_s20 + $0x170] sm:$0xff]  ;;  %v275_v8 = vld [vmem:[%s666_s20 + $0x168] sm:$0xff] }
  0x12   : > { %360 = vmatpush.msra.mxu2 %v277_v2  ;;  %579 = vmatpush.msra.mxu3 %v244_v3  ;;  %v242_v9 = vld [vmem:[%s666_s20 + $0x60] sm:$0xff]  ;;  %v241_v12 = vld [vmem:[%s666_s20 + $0x58] sm:$0xff]  ;;  %v240_v15 = vld [vmem:[%s666_s20 + $0x50] sm:$0xff] }
  0x13   : > { %332 = vmatpush.msra.mxu1 %v260_v4  ;;  %303 = vmatpush.msra.mxu0 %v244_v3  ;;  %v258_v10 = vld [vmem:[%s666_s20 + $0xe0] sm:$0xff]  ;;  %v257_v13 = vld [vmem:[%s666_s20 + $0xd8] sm:$0xff]  ;;  %v256_v16 = vld [vmem:[%s666_s20 + $0xd0] sm:$0xff] }
  0x14   : > { %361 = vmatpush.msra.mxu2 %v276_v5  ;;  %580 = vmatpush.msra.mxu3 %v243_v6  ;;  %v274_v11 = vld [vmem:[%s666_s20 + $0x160] sm:$0xff]  ;;  %v273_v14 = vld [vmem:[%s666_s20 + $0x158] sm:$0xff]  ;;  %v272_v17 = vld [vmem:[%s666_s20 + $0x150] sm:$0xff] }
  0x15   : > { %333 = vmatpush.msra.mxu1 %v259_v7  ;;  %304 = vmatpush.msra.mxu0 %v243_v6  ;;  %v239_v18 = vld [vmem:[%s666_s20 + $0x48] sm:$0xff]  ;;  %v238_v21 = vld [vmem:[%s666_s20 + $0x40] sm:$0xff]  ;;  %v237_v24 = vld [vmem:[%s666_s20 + $0x38] sm:$0xff] }
  0x16   : > { %362 = vmatpush.msra.mxu2 %v275_v8  ;;  %581 = vmatpush.msra.mxu3 %v242_v9  ;;  %v255_v19 = vld [vmem:[%s666_s20 + $0xc8] sm:$0xff]  ;;  %v254_v22 = vld [vmem:[%s666_s20 + $0xc0] sm:$0xff]  ;;  %v253_v25 = vld [vmem:[%s666_s20 + $0xb8] sm:$0xff] }
  0x17   : > { %334 = vmatpush.msra.mxu1 %v258_v10  ;;  %305 = vmatpush.msra.mxu0 %v242_v9  ;;  %v271_v20 = vld [vmem:[%s666_s20 + $0x148] sm:$0xff]  ;;  %v270_v23 = vld [vmem:[%s666_s20 + $0x140] sm:$0xff]  ;;  %v269_v26 = vld [vmem:[%s666_s20 + $0x138] sm:$0xff] }
  0x18   : > { %363 = vmatpush.msra.mxu2 %v274_v11  ;;  %582 = vmatpush.msra.mxu3 %v241_v12  ;;  %v236_v27 = vld [vmem:[%s666_s20 + $0x30] sm:$0xff]  ;;  %v235_v30 = vld [vmem:[%s666_s20 + $0x28] sm:$0xff]  ;;  %v234_v33 = vld [vmem:[%s666_s20 + $0x20] sm:$0xff] }
  0x19   : > { %335 = vmatpush.msra.mxu1 %v257_v13  ;;  %306 = vmatpush.msra.mxu0 %v241_v12  ;;  %v252_v28 = vld [vmem:[%s666_s20 + $0xb0] sm:$0xff]  ;;  %v251_v31 = vld [vmem:[%s666_s20 + $0xa8] sm:$0xff]  ;;  %v250_v34 = vld [vmem:[%s666_s20 + $0xa0] sm:$0xff] }
  0x1a   : > { %364 = vmatpush.msra.mxu2 %v273_v14  ;;  %583 = vmatpush.msra.mxu3 %v240_v15  ;;  %v268_v29 = vld [vmem:[%s666_s20 + $0x130] sm:$0xff]  ;;  %v267_v32 = vld [vmem:[%s666_s20 + $0x128] sm:$0xff]  ;;  %v266_v35 = vld [vmem:[%s666_s20 + $0x120] sm:$0xff] }
  0x1b   : > { %336 = vmatpush.msra.mxu1 %v256_v16  ;;  %307 = vmatpush.msra.mxu0 %v240_v15  ;;  %v233_v36 = vld [vmem:[%s666_s20 + $0x18] sm:$0xff]  ;;  %v232_v39 = vld [vmem:[%s666_s20 + $0x10] sm:$0xff]  ;;  %v231_v42 = vld [vmem:[%s666_s20 + $0x8] sm:$0xff] }
  0x1c   : > { %365 = vmatpush.msra.mxu2 %v272_v17  ;;  %584 = vmatpush.msra.mxu3 %v239_v18  ;;  %v249_v37 = vld [vmem:[%s666_s20 + $0x98] sm:$0xff]  ;;  %v248_v40 = vld [vmem:[%s666_s20 + $0x90] sm:$0xff]  ;;  %v247_v43 = vld [vmem:[%s666_s20 + $0x88] sm:$0xff] }
  0x1d   : > { %337 = vmatpush.msra.mxu1 %v255_v19  ;;  %308 = vmatpush.msra.mxu0 %v239_v18  ;;  %v265_v38 = vld [vmem:[%s666_s20 + $0x118] sm:$0xff]  ;;  %v264_v41 = vld [vmem:[%s666_s20 + $0x110] sm:$0xff]  ;;  %v263_v44 = vld [vmem:[%s666_s20 + $0x108] sm:$0xff] }
  0x1e   : > { %366 = vmatpush.msra.mxu2 %v271_v20  ;;  %585 = vmatpush.msra.mxu3 %v238_v21  ;;  %v230_v45 = vld [vmem:[%s666_s20] sm:$0xff]  ;;  %v225_v61 = vld [vmem:[%s814_s1 + $0x38] sm:$0xff]  ;;  %v228_v63 = vld [vmem:[%s814_s1 + $0x50] sm:$0xff] }
  0x1f   : > { %338 = vmatpush.msra.mxu1 %v254_v22  ;;  %309 = vmatpush.msra.mxu0 %v238_v21  ;;  %v246_v46 = vld [vmem:[%s666_s20 + $0x80] sm:$0xff]  ;;  %v229_v0 = vld [vmem:[%s814_s1 + $0x58] sm:$0xff] }
  0x20   : > { %367 = vmatpush.msra.mxu2 %v270_v23  ;;  %586 = vmatpush.msra.mxu3 %v237_v24  ;;  %v262_v47 = vld [vmem:[%s666_s20 + $0x100] sm:$0xff] }
  0x21   : > { %339 = vmatpush.msra.mxu1 %v253_v25  ;;  %310 = vmatpush.msra.mxu0 %v237_v24  ;;  %v226_v62 = vld [vmem:[%s814_s1 + $0x40] sm:$0xff] }
  0x22   : > { %368 = vmatpush.msra.mxu2 %v269_v26  ;;  %587 = vmatpush.msra.mxu3 %v236_v27 }
  0x23   : > { %340 = vmatpush.msra.mxu1 %v252_v28  ;;  %311 = vmatpush.msra.mxu0 %v236_v27 }
  0x24   : > { %369 = vmatpush.msra.mxu2 %v268_v29  ;;  %588 = vmatpush.msra.mxu3 %v235_v30 }
  0x25   : > { %341 = vmatpush.msra.mxu1 %v251_v31  ;;  %312 = vmatpush.msra.mxu0 %v235_v30 }
  0x26   : > { %370 = vmatpush.msra.mxu2 %v267_v32  ;;  %589 = vmatpush.msra.mxu3 %v234_v33 }
  0x27   : > { %342 = vmatpush.msra.mxu1 %v250_v34  ;;  %313 = vmatpush.msra.mxu0 %v234_v33  ;;  %v626_v33 = vmov 16.0  }
  0x28   : > { %371 = vmatpush.msra.mxu2 %v266_v35  ;;  %590 = vmatpush.msra.mxu3 %v233_v36  ;;  %607 = vrcp.f32 %v626_v33 }
  0x29   : > { %343 = vmatpush.msra.mxu1 %v249_v37  ;;  %314 = vmatpush.msra.mxu0 %v233_v36 }
  0x2a   : > { %372 = vmatpush.msra.mxu2 %v265_v38  ;;  %591 = vmatpush.msra.mxu3 %v232_v39 }
  0x2b   : > { %344 = vmatpush.msra.mxu1 %v248_v40  ;;  %315 = vmatpush.msra.mxu0 %v232_v39 }
  0x2c   : > { %373 = vmatpush.msra.mxu2 %v264_v41  ;;  %592 = vmatpush.msra.mxu3 %v231_v42 }
  0x2d   : > { %345 = vmatpush.msra.mxu1 %v247_v43  ;;  %316 = vmatpush.msra.mxu0 %v231_v42 }
  0x2e   : > { %374 = vmatpush.msra.mxu2 %v263_v44  ;;  %593 = vmatpush.msra.mxu3 %v230_v45  ;;  %v608_v34 = vpop.eup %607 }
  0x2f   : > { %346 = vmatpush.msra.mxu1 %v246_v46  ;;  %321 = vmatmul.f32.vlgmr.msra.gmra.mxu3 %v221_v48  ;;  %v403_v35 = vmul.f32 16.0, %v608_v34  ;;  %vm407_vm1 = vweird.f32 %v608_v34 }
  0x30   : > { %375 = vmatpush.msra.mxu2 %v262_v47  ;;  %347 = vmatmul.f32.vlgmr.msra.gmra.mxu1 %v219_v49 }
  0x31   : > { %376 = vmatmul.f32.vlgmr.msra.gmra.mxu2 %v220_v50  ;;  %317 = vmatpush.msra.mxu0 %v230_v45  ;;  %v404_v36 = vsub.f32 1.0, %v403_v35 }
  0x32   : > { %318 = vmatmul.f32.vlgmr.msra.gmra.mxu0 %v218_v51  ;;  %289 = vperm.xlu0 %605, %v279_v58  }
  0x33   : > { %299 = vperm.xlu1 %606, %v281_v59   ;;  %v405_v37 = vmul.f32 %v608_v34, %v404_v36  ;;  %v487_v36 = vld [vmem:[%s788_s6 + $0x10] sm:$0xff] }
  0x35   : > { %v406_v38 = vadd.f32 %v608_v34, %v405_v37 }
  0x37   : > { %324 = vmatmul.f32.gmra.mxu3 %v224_v55  ;;  %v408_v39 = vsel %vm407_vm1, %v608_v34, %v406_v38 }
  0x38   : > { %350 = vmatmul.f32.gmra.mxu1 %v222_v56 }
  0x39   : > { %379 = vmatmul.f32.gmra.mxu2 %v223_v57 }
  0x3f   : > { %327 = vmatmul.f32.gmra.mxu3 %v227_v60 }
  0x40   : > { %353 = vmatmul.f32.gmra.mxu1 %v225_v61 }
  0x41   : > { %382 = vmatmul.f32.gmra.mxu2 %v226_v62 }
  0x48   : > { %356 = vmatmul.f32.gmra.mxu1 %v228_v63 }
  0x49   : > { %385 = vmatmul.f32.gmra.mxu2 %v229_v0 }
  0x7f   : > { %v295_v15 = vpop.permute.xlu1 %294 }
  0x80   : > { %v285_v1 = vpop.permute.xlu0 %284 }
  0xa4   : > { %v290_v9 = vpop.permute.xlu0 %289 }
  0xa5   : > { %v300_v25 = vpop.permute.xlu1 %299 }
  0xad   : > { %v348_v2 = vpop.f32.mrf.mxu1 }
  0xaf   : > { %v319_v3 = vpop.f32.mrf.mxu0 }
  0xb0   : > { %v320_v4 = vadd.f32 %v319_v3, %v285_v1 }
  0xb2   : > { %v322_v5 = vpop.f32.mrf.mxu3  ;;  %v349_v6 = vadd.f32 %v348_v2, %v320_v4 }
  0xb3   : > { %v323_v11 = vadd.f32 %v322_v5, %v290_v9 }
  0xb4   : > { %v377_v7 = vpop.f32.mrf.mxu2 }
  0xb5   : > { %v378_v8 = vadd.f32 %v377_v7, %v349_v6  ;;  %v351_v10 = vpop.f32.mrf.mxu1 }
  0xb6   : > { %v352_v13 = vadd.f32 %v351_v10, %v323_v11 }
  0xb7   : > { %v390_v12 = vsel %vm389_vm0, %v378_v8, 0.0 }
  0xb8   : > { %391 = vadd.xlane.f32.xlu2 %v390_v12 }
  0xba   : > { %v325_v14 = vpop.f32.mrf.mxu3 }
  0xbb   : > { %v326_v17 = vadd.f32 %v325_v14, %v295_v15 }
  0xbc   : > { %v380_v16 = vpop.f32.mrf.mxu2 }
  0xbd   : > { %v381_v18 = vadd.f32 %v380_v16, %v352_v13  ;;  %v354_v19 = vpop.f32.mrf.mxu1  ;;  %v485_v13 = vld [vmem:[%s788_s6] sm:$0xff] }
  0xbe   : > { %v355_v21 = vadd.f32 %v354_v19, %v326_v17 }
  0xbf   : > { %v393_v20 = vsel %vm389_vm0, %v381_v18, 0.0 }
  0xc0   : > { %394 = vadd.xlane.f32.xlu2 %v393_v20 }
  0xc2   : > { %v328_v22 = vpop.f32.mrf.mxu3 }
  0xc3   : > { %v329_v26 = vadd.f32 %v328_v22, %v300_v25 }
  0xc4   : > { %v383_v23 = vpop.f32.mrf.mxu2 }
  0xc5   : > { %v384_v24 = vadd.f32 %v383_v23, %v355_v21  ;;  %v357_v28 = vpop.f32.mrf.mxu1 }
  0xc6   : > { %v358_v29 = vadd.f32 %v357_v28, %v329_v26  ;;  %v486_v26 = vld [vmem:[%s788_s6 + $0x8] sm:$0xff] }
  0xc7   : > { %v396_v27 = vsel %vm389_vm0, %v384_v24, 0.0 }
  0xc8   : > { %397 = vadd.xlane.f32.xlu0 %v396_v27 }
  0xcc   : > { %v386_v30 = vpop.f32.mrf.mxu2 }
  0xcd   : > { %v387_v31 = vadd.f32 %v386_v30, %v358_v29 }
  0xcf   : > { %v399_v32 = vsel %vm389_vm0, %v387_v31, 0.0 }
  0xd0   : > { %400 = vadd.xlane.f32.xlu1 %v399_v32 }
 0x12b   : > { %v392_v40 = vpop.xlane.xlu2 %391 }
 0x12c   : > { %v409_v41 = vmul.f32 %v408_v39, %v392_v40 }
 0x12e   : > { %v413_v42 = vsub.f32 %v378_v8, %v409_v41 }
 0x130   : > { %v417_v43 = vmul.f32 %v413_v42, %v413_v42 }
 0x132   : > { %v421_v44 = vsel %vm389_vm0, %v417_v43, 0.0 }
 0x133   : > { %422 = vadd.xlane.f32.xlu2 %v421_v44  ;;  %v395_v45 = vpop.xlane.xlu2 %394  ;;  %v488_v44 = vld [vmem:[%s788_s6 + $0x18] sm:$0xff] }
 0x134   : > { %v410_v46 = vmul.f32 %v408_v39, %v395_v45 }
 0x136   : > { %v769_v47 = vsub.f32 %v381_v18, %v410_v46 }
 0x138   : > { %v418_v48 = vmul.f32 %v769_v47, %v769_v47 }
 0x13a   : > { %v424_v49 = vsel %vm389_vm0, %v418_v48, 0.0 }
 0x13b   : > { %v398_v50 = vpop.xlane.xlu0 %397  ;;  %425 = vadd.xlane.f32.xlu2 %v424_v49 }
 0x13c   : > { %v411_v51 = vmul.f32 %v408_v39, %v398_v50 }
 0x13e   : > { %v774_v52 = vsub.f32 %v384_v24, %v411_v51 }
 0x140   : > { %v419_v53 = vmul.f32 %v774_v52, %v774_v52 }
 0x142   : > { %v427_v54 = vsel %vm389_vm0, %v419_v53, 0.0 }
 0x143   : > { %v401_v55 = vpop.xlane.xlu1 %400  ;;  %428 = vadd.xlane.f32.xlu2 %v427_v54 }
 0x144   : > { %v412_v56 = vmul.f32 %v408_v39, %v401_v55 }
 0x146   : > { %v779_v57 = vsub.f32 %v387_v31, %v412_v56 }
 0x148   : > { %v420_v58 = vmul.f32 %v779_v57, %v779_v57 }
 0x14a   : > { %v430_v59 = vsel %vm389_vm0, %v420_v58, 0.0 }
 0x14b   : > { %431 = vadd.xlane.f32.xlu2 %v430_v59 }
 0x1a6   : > { %v423_v60 = vpop.xlane.xlu2 %422 }
 0x1a7   : > { %v433_v61 = vmul.f32 %v423_v60, %v408_v39 }
 0x1a9   : > { %v437_v62 = vadd.f32 1e-05, %v433_v61 }
 0x1ab   : > { %609 = vrsqrt.f32 %v437_v62  ;;  %vm447_vm3 = vweird.f32 %v437_v62 }
 0x1ae   : > { %v426_v63 = vpop.xlane.xlu2 %425 }
 0x1af   : > { %v434_v0 = vmul.f32 %v426_v63, %v408_v39 }
 0x1b1   : > { %v610_v1 = vpop.eup %609  ;;  %v438_v2 = vadd.f32 1e-05, %v434_v0 }
 0x1b2   : > { %v442_v3 = vmul.f32 %v610_v1, %v437_v62  ;;  %vm448_vm2 = vweird.f32 %v610_v1 }
 0x1b3   : > { %611 = vrsqrt.f32 %v438_v2  ;;  %vm449_vm4 = vmor %vm447_vm3, %vm448_vm2  ;;  %vm457_vm6 = vweird.f32 %v438_v2 }
 0x1b4   : > { %v443_v4 = vmul.f32 %v610_v1, %v442_v3 }
 0x1b6   : > { %v444_v5 = vmul.f32 0.5, %v443_v4  ;;  %v429_v6 = vpop.xlane.xlu2 %428 }
 0x1b7   : > { %v435_v7 = vmul.f32 %v429_v6, %v408_v39 }
 0x1b8   : > { %v445_v8 = vsub.f32 1.5, %v444_v5 }
 0x1b9   : > { %v612_v9 = vpop.eup %611  ;;  %v439_v10 = vadd.f32 1e-05, %v435_v7 }
 0x1ba   : > { %v446_v11 = vmul.f32 %v610_v1, %v445_v8  ;;  %v452_v12 = vmul.f32 %v612_v9, %v438_v2  ;;  %vm458_vm5 = vweird.f32 %v612_v9 }
 0x1bb   : > { %613 = vrsqrt.f32 %v439_v10  ;;  %vm459_vm7 = vmor %vm457_vm6, %vm458_vm5  ;;  %vm467_vm9 = vweird.f32 %v439_v10 }
 0x1bc   : > { %v450_v14 = vsel %vm449_vm4, %v610_v1, %v446_v11  ;;  %v453_v15 = vmul.f32 %v612_v9, %v452_v12 }
 0x1bd   : > { %v481_v16 = vmul.f32 %v450_v14, %v413_v42 }
 0x1be   : > { %v454_v17 = vmul.f32 0.5, %v453_v15  ;;  %v432_v18 = vpop.xlane.xlu2 %431 }
 0x1bf   : > { %v489_v19 = vadd.f32 %v485_v13, %v481_v16  ;;  %v436_v20 = vmul.f32 %v432_v18, %v408_v39 }
 0x1c0   : > { %v455_v21 = vsub.f32 1.5, %v454_v17 }
 0x1c1   : > { %v614_v22 = vpop.eup %613  ;;  %493 = vst.msk [vmem:[%s794_s8] sm:$0xff] %vm389_vm0, %v489_v19  ;;  %v440_v23 = vadd.f32 1e-05, %v436_v20 }
 0x1c2   : > { %v456_v24 = vmul.f32 %v612_v9, %v455_v21  ;;  %v462_v25 = vmul.f32 %v614_v22, %v439_v10  ;;  %vm468_vm8 = vweird.f32 %v614_v22 }
 0x1c3   : > { %615 = vrsqrt.f32 %v440_v23  ;;  %vm469_vm10 = vmor %vm467_vm9, %vm468_vm8  ;;  %vm477_vm12 = vweird.f32 %v440_v23 }
 0x1c4   : > { %v460_v27 = vsel %vm459_vm7, %v612_v9, %v456_v24  ;;  %v463_v28 = vmul.f32 %v614_v22, %v462_v25 }
 0x1c5   : > { %v482_v29 = vmul.f32 %v460_v27, %v769_v47 }
 0x1c6   : > { %v464_v30 = vmul.f32 0.5, %v463_v28 }
 0x1c7   : > { %v490_v31 = vadd.f32 %v486_v26, %v482_v29 }
 0x1c8   : > { %v465_v32 = vsub.f32 1.5, %v464_v30 }
 0x1c9   : > { %v616_v33 = vpop.eup %615  ;;  %494 = vst.msk [vmem:[%s794_s8 + $0x8] sm:$0xff] %vm389_vm0, %v490_v31 }
 0x1ca   : > { %v466_v34 = vmul.f32 %v614_v22, %v465_v32  ;;  %v472_v35 = vmul.f32 %v616_v33, %v440_v23  ;;  %vm478_vm11 = vweird.f32 %v616_v33 }
 0x1cb   : > { %vm479_vm13 = vmor %vm477_vm12, %vm478_vm11 }
 0x1cc   : > { %v470_v37 = vsel %vm469_vm10, %v614_v22, %v466_v34  ;;  %v473_v38 = vmul.f32 %v616_v33, %v472_v35 }
 0x1cd   : > { %v483_v39 = vmul.f32 %v470_v37, %v774_v52 }
 0x1ce   : > { %v474_v40 = vmul.f32 0.5, %v473_v38 }
 0x1cf   : > { %v491_v41 = vadd.f32 %v487_v36, %v483_v39 }
 0x1d0   : > { %v475_v42 = vsub.f32 1.5, %v474_v40 }
 0x1d1   : > { %495 = vst.msk [vmem:[%s794_s8 + $0x10] sm:$0xff] %vm389_vm0, %v491_v41 }
 0x1d2   : > { %v476_v43 = vmul.f32 %v616_v33, %v475_v42 }
 0x1d4   : > { %v480_v45 = vsel %vm479_vm13, %v616_v33, %v476_v43 }
 0x1d5   : > { %v484_v46 = vmul.f32 %v480_v45, %v779_v57 }
 0x1d7   : > { %v492_v47 = vadd.f32 %v488_v44, %v484_v46 }
 0x1d9   : > { %496 = vst.msk [vmem:[%s794_s8 + $0x18] sm:$0xff] %vm389_vm0, %v492_v47 }
 0x1da PF: > { %s14_s15 = sadd.s32 1, %s623_s15  }
 0x1db   : > { %p11_p4 = scmp.ge.s32.totalorder %s14_s15, 4  }
 0x1dd   :  { %13 = sbr.rel (!%p11_p4) target bundleno = 1 (0x1), region = 69 }

</bundles_post_ra>
